<compile_context>
chip_gen: v6e
topology: v6e:2x2x1
jax: 0.10.0
libtpu: 0.0.40
codegen_flags: <defaults>
</compile_context>

<pallas_src>
import functools

import jax
import jax.numpy as jnp
from jax.experimental import pallas as pl
from jax.experimental.pallas import tpu as pltpu


def _round_up(x, m):
    return ((x + m - 1) // m) * m


def _attention_kernel(h_ref, wt_ref, enc_ref, mask_ref, out_ref,
                      proj_ref, m_ref, l_ref, acc_ref):
    # h_ref    : (TB, H)      hidden rows for this batch tile        (compute dtype)
    # wt_ref   : (H, H)       pre-transposed linear weight (in, out) (compute dtype)
    # enc_ref  : (TB, TS, H)  encoder outputs tile                   (compute dtype)
    # mask_ref : (TB, TS)     f32 mask, nonzero == masked
    # out_ref  : (TB, H)      context vectors (written at last S step)
    # scratch  : proj (TB,H) f32, m (TB,1) f32, l (TB,1) f32, acc (TB,H) f32
    si = pl.program_id(1)
    num_s = pl.num_programs(1)

    @pl.when(si == 0)
    def _init():
        # Dense MXU matmul once per batch tile: proj = hidden @ W^T.
        proj_ref[...] = jnp.dot(h_ref[...], wt_ref[...],
                                preferred_element_type=jnp.float32)
        m_ref[...] = jnp.full(m_ref.shape, -jnp.inf, dtype=jnp.float32)
        l_ref[...] = jnp.zeros(l_ref.shape, dtype=jnp.float32)
        acc_ref[...] = jnp.zeros(acc_ref.shape, dtype=jnp.float32)

    enc = enc_ref[...].astype(jnp.float32)        # (TB, TS, H), f32 for VPU math
    mask = mask_ref[...]                          # (TB, TS)
    proj = proj_ref[...]                          # (TB, H)

    # alphas[b, t] = <enc[b, t, :], proj[b, :]>  -- VPU multiply + lane reduce.
    alphas = jnp.sum(enc * proj[:, None, :], axis=-1)          # (TB, TS)
    alphas = jnp.where(mask != 0, jnp.float32(-1e16), alphas)

    # Online (flash-style) softmax accumulation over the S tiles.
    m_prev = m_ref[...]                                         # (TB, 1)
    m_new = jnp.maximum(m_prev, jnp.max(alphas, axis=-1, keepdims=True))
    corr = jnp.exp(m_prev - m_new)                              # (TB, 1)
    p = jnp.exp(alphas - m_new)                                 # (TB, TS)

    l_ref[...] = corr * l_ref[...] + jnp.sum(p, axis=-1, keepdims=True)
    acc_ref[...] = corr * acc_ref[...] + jnp.sum(p[:, :, None] * enc, axis=1)
    m_ref[...] = m_new

    @pl.when(si == num_s - 1)
    def _finalize():
        inv_l = pl.reciprocal(l_ref[...], approx=False)
        out_ref[...] = (acc_ref[...] * inv_l).astype(out_ref.dtype)


def attention_pallas(hidden, weight, encoder_output, encoder_mask, *,
                     block_b=128, block_s=512,
                     compute_dtype=jnp.float32, vmem_limit_bytes=None):
    """
    hidden         : (B, H)    float32
    weight         : (H, H)    float32  (nn.Linear weight, out x in)
    encoder_output : (B, S, H) float32
    encoder_mask   : (B, S)    nonzero => masked
    returns        : (B, H)    float32
    """
    B, S, H = encoder_output.shape
    out_dtype = hidden.dtype

    # TPU-friendly padded shapes / tile sizes (lane dim multiple of 128).
    Hp = _round_up(H, 128)
    tb = min(block_b, _round_up(B, 8))        # batch rows per grid step
    Bp = _round_up(B, tb)
    ts = min(block_s, _round_up(S, 128))      # source positions per grid step
    Sp = _round_up(S, ts)

    # One-time pre-transpose of the linear weight: (out, in) -> (in, out).
    wt = weight.T

    # Zero-pad activations / weight; pad mask with 1.0 so padded S positions
    # (and padded batch rows) are treated as masked.
    h_p = jnp.zeros((Bp, Hp), hidden.dtype).at[:B, :H].set(hidden)
    wt_p = jnp.zeros((Hp, Hp), weight.dtype).at[:H, :H].set(wt)
    enc_p = jnp.zeros((Bp, Sp, Hp), encoder_output.dtype).at[:B, :S, :H].set(
        encoder_output)
    mask_p = jnp.ones((Bp, Sp), jnp.float32).at[:B, :S].set(
        encoder_mask.astype(jnp.float32))

    # Bandwidth/MXU operands may be narrowed (bf16); softmax stays f32 in-kernel.
    h_p = h_p.astype(compute_dtype)
    wt_p = wt_p.astype(compute_dtype)
    enc_p = enc_p.astype(compute_dtype)

    nb = Bp // tb
    ns = Sp // ts

    grid_spec = pltpu.PrefetchScalarGridSpec(
        num_scalar_prefetch=0,
        grid=(nb, ns),
        in_specs=[
            pl.BlockSpec((tb, Hp), lambda bi, si: (bi, 0)),        # hidden tile
            # Constant index_map: Pallas re-uses this tile across the grid.
            pl.BlockSpec((Hp, Hp), lambda bi, si: (0, 0)),         # weight^T
            pl.BlockSpec((tb, ts, Hp), lambda bi, si: (bi, si, 0)),  # encoder tile
            pl.BlockSpec((tb, ts), lambda bi, si: (bi, si)),       # mask tile
        ],
        out_specs=pl.BlockSpec((tb, Hp), lambda bi, si: (bi, 0)),  # lane-dense out
        scratch_shapes=[
            pltpu.VMEM((tb, Hp), jnp.float32),   # proj (persist across S tiles)
            pltpu.VMEM((tb, 1), jnp.float32),    # running max m
            pltpu.VMEM((tb, 1), jnp.float32),    # running denom l
            pltpu.VMEM((tb, Hp), jnp.float32),   # running context acc
        ],
    )

    cp_kwargs = dict(dimension_semantics=("parallel", "arbitrary"))
    if vmem_limit_bytes is not None:   # raise above the scoped default on v6e
        cp_kwargs["vmem_limit_bytes"] = vmem_limit_bytes

    out_p = pl.pallas_call(
        _attention_kernel,
        out_shape=jax.ShapeDtypeStruct((Bp, Hp), jnp.float32),
        grid_spec=grid_spec,
        compiler_params=pltpu.CompilerParams(**cp_kwargs),
    )(h_p, wt_p, enc_p, mask_p)

    return out_p[:B, :H].astype(out_dtype)


def attention_reference(hidden, weight, encoder_output, encoder_mask):
    """Pure-JAX reference mirroring the PyTorch forward."""
    h = hidden @ weight.T                                   # (B, H)
    alphas = jnp.einsum("bsh,bh->bs", encoder_output, h)    # (B, S)
    alphas = jnp.where(encoder_mask != 0, -1e16, alphas)
    scores = jax.nn.softmax(alphas, axis=1)                 # (B, S)
    return jnp.einsum("bs,bsh->bh", scores, encoder_output)  # (B, H)


if __name__ == "__main__":
    B, S, H = 2, 8, 32
    key = jax.random.PRNGKey(0)
    k_w, k_h, k_e = jax.random.split(key, 3)

    # Deterministic synthetic parameters / inputs (no checkpoint loading).
    weight = jax.random.normal(k_w, (H, H), dtype=jnp.float32) * 0.1
    hidden = jax.random.normal(k_h, (B, H), dtype=jnp.float32)
    encoder_output = jax.random.normal(k_e, (B, S, H), dtype=jnp.float32)

    # Mask out the tail of each sequence (simulating padding), as float mask.
    lengths = jnp.array([6, 4], dtype=jnp.int32)
    pos = jnp.arange(S)[None, :]
    encoder_mask = (pos >= lengths[:, None]).astype(jnp.float32)  # (B, S)

    ref = attention_reference(hidden, weight, encoder_output, encoder_mask)

    # Full-precision path: tight check against the reference.
    out_f32 = attention_pallas(hidden, weight, encoder_output, encoder_mask,
                               compute_dtype=jnp.float32)
    out_f32 = jax.block_until_ready(out_f32)
    assert out_f32.shape == (B, H)
    assert jnp.allclose(out_f32, ref, atol=1e-4, rtol=1e-4), \
        "Pallas kernel (f32) mismatch vs reference"

    # bf16 matmul operands (recommended production config): looser tolerance.
    out_bf16 = attention_pallas(hidden, weight, encoder_output, encoder_mask,
                                compute_dtype=jnp.bfloat16)
    out_bf16 = jax.block_until_ready(out_bf16)
    assert out_bf16.shape == (B, H)
    assert jnp.allclose(out_bf16, ref, atol=1e-1, rtol=1e-1), \
        "Pallas kernel (bf16) mismatch vs reference"

    print("KERNEL_OK")
</pallas_src>

<mosaic_0001>
module attributes {stable_mosaic.version = 11 : i64} {
  func.func @_attention_kernel(%arg0: i32, %arg1: i32, %arg2: memref<8x128xf32, #tpu.memory_space<vmem>>, %arg3: memref<128x128xf32, #tpu.memory_space<vmem>>, %arg4: memref<8x128x128xf32, #tpu.memory_space<vmem>>, %arg5: memref<8x128xf32, #tpu.memory_space<vmem>>, %arg6: memref<8x128xf32, #tpu.memory_space<vmem>>, %arg7: memref<8x128xf32, #tpu.memory_space<vmem>>, %arg8: memref<8x1xf32, #tpu.memory_space<vmem>>, %arg9: memref<8x1xf32, #tpu.memory_space<vmem>>, %arg10: memref<8x128xf32, #tpu.memory_space<vmem>>) attributes {dimension_semantics = [#tpu.dimension_semantics<parallel>, #tpu.dimension_semantics<arbitrary>], iteration_bounds = array<i64: 1, 1>, scalar_prefetch = 0 : i64, scratch_operands = 4 : i64, tpu.core_type = #tpu.core_type<tc>, window_params = [{transform_indices = @transform_0, window_bounds = array<i64: 8, 128>}, {pipeline_mode = #tpu.pipeline_mode<synchronous>, transform_indices = @transform_1, window_bounds = array<i64: 128, 128>}, {transform_indices = @transform_2, window_bounds = array<i64: 8, 128, 128>}, {transform_indices = @transform_3, window_bounds = array<i64: 8, 128>}, {transform_indices = @transform_4, window_bounds = array<i64: 8, 128>}]} {
    %c0_i32 = arith.constant 0 : i32
    %0 = arith.cmpi eq, %arg1, %c0_i32 : i32
    %1 = arith.extui %0 : i1 to i32
    %c0_i32_0 = arith.constant 0 : i32
    %2 = arith.cmpi ne, %1, %c0_i32_0 : i32
    scf.if %2 {
      %c0_26 = arith.constant 0 : index
      %c0_27 = arith.constant 0 : index
      %42 = vector.load %arg2[%c0_26, %c0_27] : memref<8x128xf32, #tpu.memory_space<vmem>>, vector<8x128xf32>
      %c0_28 = arith.constant 0 : index
      %c0_29 = arith.constant 0 : index
      %43 = vector.load %arg3[%c0_28, %c0_29] : memref<128x128xf32, #tpu.memory_space<vmem>>, vector<128x128xf32>
      %cst_30 = arith.constant dense<0.000000e+00> : vector<8x128xf32>
      %44 = tpu.matmul %42, %43, %cst_30 {dimension_numbers = #tpu.dot_dimension_numbers<[1], [0], [0], [1], [0, 0, 1, 1], [], []>} : vector<8x128xf32>, vector<128x128xf32>, vector<8x128xf32> -> vector<8x128xf32>
      %c0_31 = arith.constant 0 : index
      %c0_32 = arith.constant 0 : index
      %45 = vector.load %arg7[%c0_31, %c0_32] : memref<8x128xf32, #tpu.memory_space<vmem>>, vector<8x128xf32>
      tpu.vector_store %arg7[%c0_31, %c0_32], %44 {strides = array<i32>} : memref<8x128xf32, #tpu.memory_space<vmem>>, vector<8x128xf32>,
      %cst_33 = arith.constant 0xFF800000 : f32
      %46 = vector.broadcast %cst_33 : f32 to vector<8x1xf32>
      %c0_34 = arith.constant 0 : index
      %c0_35 = arith.constant 0 : index
      %47 = vector.load %arg8[%c0_34, %c0_35] : memref<8x1xf32, #tpu.memory_space<vmem>>, vector<8x1xf32>
      tpu.vector_store %arg8[%c0_34, %c0_35], %46 {strides = array<i32>} : memref<8x1xf32, #tpu.memory_space<vmem>>, vector<8x1xf32>,
      %cst_36 = arith.constant 0.000000e+00 : f32
      %48 = vector.broadcast %cst_36 : f32 to vector<8x1xf32>
      %c0_37 = arith.constant 0 : index
      %c0_38 = arith.constant 0 : index
      %49 = vector.load %arg9[%c0_37, %c0_38] : memref<8x1xf32, #tpu.memory_space<vmem>>, vector<8x1xf32>
      tpu.vector_store %arg9[%c0_37, %c0_38], %48 {strides = array<i32>} : memref<8x1xf32, #tpu.memory_space<vmem>>, vector<8x1xf32>,
      %cst_39 = arith.constant 0.000000e+00 : f32
      %50 = vector.broadcast %cst_39 : f32 to vector<8x128xf32>
      %c0_40 = arith.constant 0 : index
      %c0_41 = arith.constant 0 : index
      %51 = vector.load %arg10[%c0_40, %c0_41] : memref<8x128xf32, #tpu.memory_space<vmem>>, vector<8x128xf32>
      tpu.vector_store %arg10[%c0_40, %c0_41], %50 {strides = array<i32>} : memref<8x128xf32, #tpu.memory_space<vmem>>, vector<8x128xf32>,
    } else {
    }
    %c0 = arith.constant 0 : index
    %c0_1 = arith.constant 0 : index
    %c0_2 = arith.constant 0 : index
    %3 = vector.load %arg4[%c0, %c0_1, %c0_2] : memref<8x128x128xf32, #tpu.memory_space<vmem>>, vector<8x128x128xf32>
    %c0_3 = arith.constant 0 : index
    %c0_4 = arith.constant 0 : index
    %4 = vector.load %arg5[%c0_3, %c0_4] : memref<8x128xf32, #tpu.memory_space<vmem>>, vector<8x128xf32>
    %c0_5 = arith.constant 0 : index
    %c0_6 = arith.constant 0 : index
    %5 = vector.load %arg7[%c0_5, %c0_6] : memref<8x128xf32, #tpu.memory_space<vmem>>, vector<8x128xf32>
    %6 = vector.shape_cast %5 : vector<8x128xf32> to vector<8x1x128xf32>
    %7 = vector.broadcast %6 : vector<8x1x128xf32> to vector<8x128x128xf32>
    %8 = arith.mulf %3, %7 : vector<8x128x128xf32>
    %cst = arith.constant dense<0.000000e+00> : vector<8x128xf32>
    %9 = vector.multi_reduction <add>, %8, %cst [2] : vector<8x128x128xf32> to vector<8x128xf32>
    %cst_7 = arith.constant 0.000000e+00 : f32
    %10 = vector.broadcast %cst_7 : f32 to vector<8x128xf32>
    %11 = arith.cmpf one, %4, %10 : vector<8x128xf32>
    %cst_8 = arith.constant -1.000000e+16 : f32
    %12 = vector.broadcast %cst_8 : f32 to vector<8x128xf32>
    %13 = arith.select %11, %12, %9 : vector<8x128xi1>, vector<8x128xf32>
    %c0_9 = arith.constant 0 : index
    %c0_10 = arith.constant 0 : index
    %14 = vector.load %arg8[%c0_9, %c0_10] : memref<8x1xf32, #tpu.memory_space<vmem>>, vector<8x1xf32>
    %cst_11 = arith.constant dense<0xFF800000> : vector<8xf32>
    %15 = vector.multi_reduction <maximumf>, %13, %cst_11 [1] : vector<8x128xf32> to vector<8xf32>
    %16 = vector.shape_cast %15 : vector<8xf32> to vector<8x1xf32>
    %17 = arith.maximumf %14, %16 : vector<8x1xf32>
    %18 = arith.subf %14, %17 : vector<8x1xf32>
    %19 = math.exp %18 : vector<8x1xf32>
    %20 = vector.broadcast %17 : vector<8x1xf32> to vector<8x128xf32>
    %21 = arith.subf %13, %20 : vector<8x128xf32>
    %22 = math.exp %21 : vector<8x128xf32>
    %c0_12 = arith.constant 0 : index
    %c0_13 = arith.constant 0 : index
    %23 = vector.load %arg9[%c0_12, %c0_13] : memref<8x1xf32, #tpu.memory_space<vmem>>, vector<8x1xf32>
    %24 = arith.mulf %19, %23 : vector<8x1xf32>
    %cst_14 = arith.constant dense<0.000000e+00> : vector<8xf32>
    %25 = vector.multi_reduction <add>, %22, %cst_14 [1] : vector<8x128xf32> to vector<8xf32>
    %26 = vector.shape_cast %25 : vector<8xf32> to vector<8x1xf32>
    %27 = arith.addf %24, %26 : vector<8x1xf32>
    %c0_15 = arith.constant 0 : index
    %c0_16 = arith.constant 0 : index
    %28 = vector.load %arg9[%c0_15, %c0_16] : memref<8x1xf32, #tpu.memory_space<vmem>>, vector<8x1xf32>
    tpu.vector_store %arg9[%c0_15, %c0_16], %27 {strides = array<i32>} : memref<8x1xf32, #tpu.memory_space<vmem>>, vector<8x1xf32>,
    %c0_17 = arith.constant 0 : index
    %c0_18 = arith.constant 0 : index
    %29 = vector.load %arg10[%c0_17, %c0_18] : memref<8x128xf32, #tpu.memory_space<vmem>>, vector<8x128xf32>
    %30 = vector.broadcast %19 : vector<8x1xf32> to vector<8x128xf32>
    %31 = arith.mulf %30, %29 : vector<8x128xf32>
    %32 = vector.shape_cast %22 : vector<8x128xf32> to vector<8x128x1xf32>
    %33 = vector.broadcast %32 : vector<8x128x1xf32> to vector<8x128x128xf32>
    %34 = arith.mulf %33, %3 : vector<8x128x128xf32>
    %cst_19 = arith.constant dense<0.000000e+00> : vector<8x128xf32>
    %35 = vector.multi_reduction <add>, %34, %cst_19 [1] : vector<8x128x128xf32> to vector<8x128xf32>
    %36 = arith.addf %31, %35 : vector<8x128xf32>
    %c0_20 = arith.constant 0 : index
    %c0_21 = arith.constant 0 : index
    %37 = vector.load %arg10[%c0_20, %c0_21] : memref<8x128xf32, #tpu.memory_space<vmem>>, vector<8x128xf32>
    tpu.vector_store %arg10[%c0_20, %c0_21], %36 {strides = array<i32>} : memref<8x128xf32, #tpu.memory_space<vmem>>, vector<8x128xf32>,
    %c0_22 = arith.constant 0 : index
    %c0_23 = arith.constant 0 : index
    %38 = vector.load %arg8[%c0_22, %c0_23] : memref<8x1xf32, #tpu.memory_space<vmem>>, vector<8x1xf32>
    tpu.vector_store %arg8[%c0_22, %c0_23], %17 {strides = array<i32>} : memref<8x1xf32, #tpu.memory_space<vmem>>, vector<8x1xf32>,
    %c0_i32_24 = arith.constant 0 : i32
    %39 = arith.cmpi eq, %arg1, %c0_i32_24 : i32
    %40 = arith.extui %39 : i1 to i32
    %c0_i32_25 = arith.constant 0 : i32
    %41 = arith.cmpi ne, %40, %c0_i32_25 : i32
    scf.if %41 {
      %c0_26 = arith.constant 0 : index
      %c0_27 = arith.constant 0 : index
      %42 = vector.load %arg9[%c0_26, %c0_27] : memref<8x1xf32, #tpu.memory_space<vmem>>, vector<8x1xf32>
      %43 = tpu.reciprocal %42 : vector<8x1xf32> -> vector<8x1xf32>
      %c0_28 = arith.constant 0 : index
      %c0_29 = arith.constant 0 : index
      %44 = vector.load %arg10[%c0_28, %c0_29] : memref<8x128xf32, #tpu.memory_space<vmem>>, vector<8x128xf32>
      %45 = vector.broadcast %43 : vector<8x1xf32> to vector<8x128xf32>
      %46 = arith.mulf %44, %45 : vector<8x128xf32>
      %c0_30 = arith.constant 0 : index
      %c0_31 = arith.constant 0 : index
      %47 = vector.load %arg6[%c0_30, %c0_31] : memref<8x128xf32, #tpu.memory_space<vmem>>, vector<8x128xf32>
      tpu.vector_store %arg6[%c0_30, %c0_31], %46 {strides = array<i32>} : memref<8x128xf32, #tpu.memory_space<vmem>>, vector<8x128xf32>,
    } else {
    }
    return
  }
  func.func @transform_0(%arg0: i32, %arg1: i32) -> (i32, i32) {
    %c0_i32 = arith.constant 0 : i32
    %c0_i32_0 = arith.constant 0 : i32
    return %arg0, %c0_i32 : i32, i32
  }
  func.func @transform_1(%arg0: i32, %arg1: i32) -> (i32, i32) {
    %c0_i32 = arith.constant 0 : i32
    %c0_i32_0 = arith.constant 0 : i32
    %c0_i32_1 = arith.constant 0 : i32
    return %c0_i32, %c0_i32_0 : i32, i32
  }
  func.func @transform_2(%arg0: i32, %arg1: i32) -> (i32, i32, i32) {
    %c0_i32 = arith.constant 0 : i32
    %c0_i32_0 = arith.constant 0 : i32
    return %arg0, %arg1, %c0_i32 : i32, i32, i32
  }
  func.func @transform_3(%arg0: i32, %arg1: i32) -> (i32, i32) {
    %c0_i32 = arith.constant 0 : i32
    return %arg0, %arg1 : i32, i32
  }
  func.func @transform_4(%arg0: i32, %arg1: i32) -> (i32, i32) {
    %c0_i32 = arith.constant 0 : i32
    %c0_i32_0 = arith.constant 0 : i32
    return %arg0, %c0_i32 : i32, i32
  }
}

</mosaic_0001>

<bundles_post_ra>
// kernel: tpu_custom_call.1
= control target key start
LH: loop header
LB: loop body
LE: loop exit
PB: predicated region body
PF: predicated region fallthrough
CT: control target
= control target key end

     0   :  { %9 = vsyncpa [#allocation7], 0  ;;  %s3770_s0 = inlined_call_operand.hbm [shape: f32[8,128], index: 0, kind: input, shape index: {}]   ;;  %s3771_s1 = inlined_call_operand.hbm [shape: f32[128,128], index: 1, kind: input, shape index: {}]   ;;  %s3772_s2 = inlined_call_operand.hbm [shape: f32[8,128,128], index: 2, kind: input, shape index: {}]   ;;  %s3773_s3 = inlined_call_operand.hbm [shape: f32[8,128], index: 3, kind: input, shape index: {}]   ;;  %s3774_s4 = inlined_call_operand.hbm [shape: f32[8,128], index: 4, kind: output, shape index: {}]  }
   0x1   :  { %10 = vsyncpa [#allocation10], 0 }
   0x2   :  { %11 = vsyncpa [#allocation13], 0 }
   0x3   :  { %12 = vsyncpa [#allocation8], 0  ;;  %s2796_s15 = smov [#allocation9]  }
   0x4   :  { %s28_s16 = sshll.u32 %s2796_s15, 4  ;;  %s29_s16 = int_to_ptr.vmem [resolvable:$true] %s28_s16 }
   0x5   :  { %s2696_s17 = scalar_lea.vmem %s29_s16, 2048  ;;  %p2701_p1 = scmp.lt.s32.totalorder %s29_s16, %s29_s16 }
   0x6   :  { %p2697_p0 = scmp.ne.s32.totalorder %s29_s16, %s2696_s17  ;;  %p2702_p2 = scmp.lt.s32.totalorder %s2696_s17, %s2696_s17 }
   0x8   :  { %p2703_p3 = por %p2702_p2, %p2701_p1 }
   0xa   :  { %p2704_p4 = pnand %p2703_p3, %p2697_p0 }
   0xc   :  { %2707 = shalt.err (!%p2704_p4)
}
   0xd   :  { %s2797_s18 = smov 128   ;;  %s2798_s19 = smov 8  }
   0xe   :  { %34 = dma.hbm_to_vmem [thread:$0]  %s3771_s1, 2048, %s29_s16, [#allocation10], %s2797_s18, %s2797_s18, %s2798_s19  }
   0xf   :  { %s2799_s22 = smov [#allocation6]   ;;  %s2800_s24 = smov [#allocation11]  }
  0x10   :  { %s19_s23 = sshll.u32 %s2799_s22, 4  ;;  %s40_s25 = sshll.u32 %s2800_s24, 4  ;;  %s20_s23 = int_to_ptr.vmem [resolvable:$true] %s19_s23  ;;  %s41_s25 = int_to_ptr.vmem [resolvable:$true] %s40_s25 }
  0x11   :  { %s2716_s26 = scalar_lea.vmem %s20_s23, 128  ;;  %p2721_p6 = scmp.lt.s32.totalorder %s20_s23, %s20_s23 }
  0x12   :  { %p2717_p5 = scmp.ne.s32.totalorder %s20_s23, %s2716_s26  ;;  %p2722_p7 = scmp.lt.s32.totalorder %s2716_s26, %s2716_s26 }
  0x14   :  { %p2723_p8 = por %p2722_p7, %p2721_p6 }
  0x16   :  { %p2724_p9 = pnand %p2723_p8, %p2717_p5 }
  0x18   :  { %2727 = shalt.err (!%p2724_p9)
}
  0x19   :  { %22 = dma.hbm_to_vmem [thread:$0]  %s3770_s0, 128, %s20_s23, [#allocation7]  }
  0x1a   :  { %s2736_s29 = scalar_lea.vmem %s41_s25, 16384  ;;  %p2741_p11 = scmp.lt.s32.totalorder %s41_s25, %s41_s25 }
  0x1b   :  { %p2737_p10 = scmp.ne.s32.totalorder %s41_s25, %s2736_s29  ;;  %p2742_p12 = scmp.lt.s32.totalorder %s2736_s29, %s2736_s29 }
  0x1d   :  { %p2743_p13 = por %p2742_p12, %p2741_p11 }
  0x1f   :  { %p2744_p0 = pnand %p2743_p13, %p2737_p10 }
  0x21   :  { %2747 = shalt.err (!%p2744_p0)
}
  0x22   :  { %46 = dma.hbm_to_vmem [thread:$0]  %s3772_s2, 16384, %s41_s25, [#allocation10], %s2797_s18, %s2797_s18, %s2798_s19  }
  0x23   :  { %s2801_s5 = smov [#allocation12]  }
  0x24   :  { %s53_s6 = sshll.u32 %s2801_s5, 4  ;;  %s54_s6 = int_to_ptr.vmem [resolvable:$true] %s53_s6 }
  0x25   :  { %s2756_s7 = scalar_lea.vmem %s54_s6, 128  ;;  %p2761_p2 = scmp.lt.s32.totalorder %s54_s6, %s54_s6 }
  0x26   :  { %p2757_p1 = scmp.ne.s32.totalorder %s54_s6, %s2756_s7  ;;  %p2762_p3 = scmp.lt.s32.totalorder %s2756_s7, %s2756_s7 }
  0x28   :  { %p2763_p4 = por %p2762_p3, %p2761_p2 }
  0x2a   :  { %p2764_p5 = pnand %p2763_p4, %p2757_p1 }
  0x2c   :  { %2767 = shalt.err (!%p2764_p5)
}
  0x2d   :  { %56 = dma.hbm_to_vmem [thread:$0]  %s3773_s3, 128, %s54_s6, [#allocation13]  }
  0x2e   :  { %2788 = dma.done.wait [#allocation7], 128  }
  0x2f   :  { %2789 = vsyncadd [#allocation7], 4294967168 }
  0x30   :  { %2790 = dma.done.wait [#allocation10], 18432  }
  0x31   :  { %2791 = vsyncadd [#allocation10], 4294948864 }
  0x32   :  { %2792 = dma.done.wait [#allocation13], 128  }
  0x33   :  { %2793 = vsyncadd [#allocation13], 4294967168  ;;  %v2802_v0 = vmov 0.0   ;;  %vm2803_vm0 = vmmov 0   ;;  %v89_v1 = vld [vmem:[#allocation9 + $0x78] sm:$0xff]  ;;  %v88_v2 = vld [vmem:[#allocation9 + $0x70] sm:$0xff]  ;;  %v300_v20 = vlaneseq }
  0x34   :  { %2505 = vmatprep.subr.mxu0 %v2802_v0  ;;  %2537 = vmatprep.mubr.msk.f32.mxu0 %vm2803_vm0, %v2802_v0  ;;  %v87_v3 = vld [vmem:[#allocation9 + $0x68] sm:$0xff]  ;;  %v86_v4 = vld [vmem:[#allocation9 + $0x60] sm:$0xff]  ;;  %v85_v5 = vld [vmem:[#allocation9 + $0x58] sm:$0xff]  ;;  %v2804_v18 = vmov 1966171168   ;;  %vm909_vm1 = vcmask 130112  }
  0x35   :  { %2506 = vmatpush3.msra.mxu0 %v89_v1  ;;  %v84_v6 = vld [vmem:[#allocation9 + $0x50] sm:$0xff]  ;;  %v83_v7 = vld [vmem:[#allocation9 + $0x48] sm:$0xff]  ;;  %v82_v8 = vld [vmem:[#allocation9 + $0x40] sm:$0xff]  ;;  %v298_v19 = vunpack.c.l.s4 %v2804_v18  ;;  %v2863_v22 = vshrl.u32 %v300_v20, 7  ;;  %vm916_vm2 = vcmask 195712   ;;  %vm923_vm3 = vcmask 261312  }
  0x36   :  { %2507 = vmatprep.subr.mxu0 %v2802_v0  ;;  %v81_v9 = vld [vmem:[#allocation9 + $0x38] sm:$0xff]  ;;  %v80_v10 = vld [vmem:[#allocation9 + $0x30] sm:$0xff]  ;;  %v79_v11 = vld [vmem:[#allocation9 + $0x28] sm:$0xff]  ;;  %vm930_vm4 = vcmask 326912   ;;  %vm937_vm5 = vcmask 392512   ;;  %vm944_vm6 = vcmask 458112  }
  0x37   :  { %2508 = vmatpush3.msra.mxu0 %v88_v2  ;;  %v78_v12 = vld [vmem:[#allocation9 + $0x20] sm:$0xff]  ;;  %v77_v13 = vld [vmem:[#allocation9 + $0x18] sm:$0xff]  ;;  %v76_v14 = vld [vmem:[#allocation9 + $0x10] sm:$0xff]  ;;  %v299_v21 = vunpack.c.0.s8 %v298_v19  ;;  %3779 = vst [vmem:[#allocation19_spill] sm:$0xff] %v2863_v22  ;;  %v2867_v27 = vsub.s32 0, %v2863_v22  ;;  %vm951_vm7 = vcmask 523712  }
  0x38   :  { %2509 = vmatprep.subr.mxu0 %v2802_v0  ;;  %v75_v15 = vld [vmem:[#allocation9 + $0x8] sm:$0xff]  ;;  %v74_v16 = vld [vmem:[#allocation9] sm:$0xff]  ;;  %v73_v17 = vld [vmem:[#allocation6] sm:$0xff]  ;;  %vm958_vm8 = vcmask 589312   ;;  %vm965_vm9 = vcmask 654912   ;;  %vm972_vm10 = vcmask 720512  }
  0x39   :  { %2510 = vmatpush3.msra.mxu0 %v87_v3  ;;  %v302_v23 = vsub.s32 %v299_v21, %v2863_v22  ;;  %3780 = vst [vmem:[#allocation20_spill] sm:$0xff] %v2867_v27  ;;  %v167_v33 = vld [vmem:[#allocation11 + $0x10] sm:$0xff]  ;;  %v165_v34 = vld [vmem:[#allocation11] sm:$0xff]  ;;  %v168_v39 = vld [vmem:[#allocation11 + $0x18] sm:$0xff]  ;;  %vm979_vm11 = vcmask 786112   ;;  %vm986_vm12 = vcmask 851712  }
  0x3a   :  { %2511 = vmatprep.subr.mxu0 %v2802_v0  ;;  %v166_v40 = vld [vmem:[#allocation11 + $0x8] sm:$0xff]  ;;  %v169_v44 = vld [vmem:[#allocation11 + $0x20] sm:$0xff]  ;;  %v172_v47 = vld [vmem:[#allocation11 + $0x38] sm:$0xff]  ;;  %vm993_vm13 = vcmask 917312   ;;  %vm1000_vm14 = vcmask 982912   ;;  %vm1007_vm15 = vcmask 1048512  }
  0x3b   :  { %2512 = vmatpush3.msra.mxu0 %v86_v4  ;;  %v170_v43 = vld [vmem:[#allocation11 + $0x28] sm:$0xff]  ;;  %v171_v48 = vld [vmem:[#allocation11 + $0x30] sm:$0xff]  ;;  %v173_v52 = vld [vmem:[#allocation11 + $0x40] sm:$0xff]  ;;  %vm3775_vm0 = vcmask 1041409   ;;  %s2807_s2 = smov [#allocation14]  }
  0x3c   :  { %2513 = vmatprep.subr.mxu0 %v2802_v0  ;;  %v174_v51 = vld [vmem:[#allocation11 + $0x48] sm:$0xff]  ;;  %v176_v55 = vld [vmem:[#allocation11 + $0x58] sm:$0xff]  ;;  %v175_v56 = vld [vmem:[#allocation11 + $0x50] sm:$0xff]  ;;  %s2477_s3 = sshll.u32 %s2807_s2, 4  ;;  %s2478_s3 = int_to_ptr.vmem [resolvable:$true] %s2477_s3 }
  0x3d   :  { %2514 = vmatpush3.msra.mxu0 %v85_v5  ;;  %v178_v60 = vld [vmem:[#allocation11 + $0x68] sm:$0xff]  ;;  %v177_v61 = vld [vmem:[#allocation11 + $0x60] sm:$0xff]  ;;  %v180_v2 = vld [vmem:[#allocation11 + $0x78] sm:$0xff]  ;;  %s2768_s9 = scalar_lea.vmem %s2478_s3, 128  ;;  %p2773_p7 = scmp.lt.s32.totalorder %s2478_s3, %s2478_s3 }
  0x3e   :  { %2515 = vmatprep.subr.mxu0 %v2802_v0  ;;  %v179_v3 = vld [vmem:[#allocation11 + $0x70] sm:$0xff]  ;;  %v188_v19 = vld [vmem:[#allocation11 + $0xb8] sm:$0xff]  ;;  %p2769_p6 = scmp.ne.s32.totalorder %s2478_s3, %s2768_s9  ;;  %p2774_p8 = scmp.lt.s32.totalorder %s2768_s9, %s2768_s9 }
  0x3f   :  { %2516 = vmatpush3.msra.mxu0 %v84_v6  ;;  %v187_v21 = vld [vmem:[#allocation11 + $0xb0] sm:$0xff] }
  0x40   :  { %2517 = vmatprep.subr.mxu0 %v2802_v0  ;;  %p2775_p9 = por %p2774_p8, %p2773_p7 }
  0x41   :  { %2518 = vmatpush3.msra.mxu0 %v83_v7  ;;  %v182_v7 = vld [vmem:[#allocation11 + $0x88] sm:$0xff] }
  0x42   :  { %2519 = vmatprep.subr.mxu0 %v2802_v0  ;;  %p2776_p10 = pnand %p2775_p9, %p2769_p6 }
  0x43   :  { %2520 = vmatpush3.msra.mxu0 %v82_v8  ;;  %v181_v8 = vld [vmem:[#allocation11 + $0x80] sm:$0xff] }
  0x44   :  { %2521 = vmatprep.subr.mxu0 %v2802_v0 }
  0x45   :  { %2522 = vmatpush3.msra.mxu0 %v81_v9 }
  0x46   :  { %2523 = vmatprep.subr.mxu0 %v2802_v0 }
  0x47   :  { %2524 = vmatpush3.msra.mxu0 %v80_v10 }
  0x48   :  { %2525 = vmatprep.subr.mxu0 %v2802_v0 }
  0x49   :  { %2526 = vmatpush3.msra.mxu0 %v79_v11  ;;  %v184_v11 = vld [vmem:[#allocation11 + $0x98] sm:$0xff] }
  0x4a   :  { %2527 = vmatprep.subr.mxu0 %v2802_v0 }
  0x4b   :  { %2528 = vmatpush3.msra.mxu0 %v78_v12  ;;  %v183_v12 = vld [vmem:[#allocation11 + $0x90] sm:$0xff] }
  0x4c   :  { %2529 = vmatprep.subr.mxu0 %v2802_v0 }
  0x4d   :  { %2530 = vmatpush3.msra.mxu0 %v77_v13 }
  0x4e   :  { %2531 = vmatprep.subr.mxu0 %v2802_v0 }
  0x4f   :  { %2532 = vmatpush3.msra.mxu0 %v76_v14 }
  0x50   :  { %2533 = vmatprep.subr.mxu0 %v2802_v0 }
  0x51   :  { %2534 = vmatpush3.msra.mxu0 %v75_v15  ;;  %v186_v15 = vld [vmem:[#allocation11 + $0xa8] sm:$0xff] }
  0x52   :  { %2535 = vmatprep.subr.mxu0 %v2802_v0 }
  0x53   :  { %2536 = vmatpush3.msra.mxu0 %v74_v16  ;;  %v185_v16 = vld [vmem:[#allocation11 + $0xa0] sm:$0xff] }
  0x54   :  { %2538 = vmatmul.mubr.f32.vlgmr.msra.gmra.mxu0 %v73_v17 }
 0x114   :  { %v156_v24 = vpop.f32.mrf.mxu0 }
 0x115   :  { %v296_v25 = vcombine.high %v156_v24, %v156_v24  ;;  %v303_v26 = vrot.slane %v156_v24, %v302_v23 }
 0x116   :  { %v2539_v28 = vpop.f32.mrf.mxu0 }
 0x117   :  { %v310_v29 = vrot.slane %v296_v25, %v302_v23  ;;  %v2869_v30 = vrot.slane %v303_v26, %v302_v23  ;;  %v311_v57 = vcombine.high %v303_v26, %v303_v26  ;;  %v190_v25 = vld [vmem:[#allocation11 + $0xc8] sm:$0xff]  ;;  %v189_v26 = vld [vmem:[#allocation11 + $0xc0] sm:$0xff] }
 0x119   :  { %v312_v31 = vcombine.high %v310_v29, %v310_v29  ;;  %v2871_v32 = vrot.slane %v310_v29, %v302_v23  ;;  %v348_v35 = vrot.slane %v2869_v30, %v2867_v27  ;;  %v2877_v62 = vrot.slane %v311_v57, %v302_v23 }
 0x11b   :  { %v2875_v36 = vrot.slane %v312_v31, %v302_v23  ;;  %v387_v37 = vmul.f32 %v348_v35, %v167_v33  ;;  %v385_v38 = vmul.f32 %v348_v35, %v165_v34  ;;  %v388_v41 = vmul.f32 %v348_v35, %v168_v39  ;;  %v192_v31 = vld [vmem:[#allocation11 + $0xd8] sm:$0xff]  ;;  %v191_v33 = vld [vmem:[#allocation11 + $0xd0] sm:$0xff] }
 0x11c   :  { %v386_v42 = vmul.f32 %v348_v35, %v166_v40  ;;  %v390_v45 = vmul.f32 %v348_v35, %v170_v43  ;;  %v389_v46 = vmul.f32 %v348_v35, %v169_v44  ;;  %v392_v49 = vmul.f32 %v348_v35, %v172_v47  ;;  %v195_v43 = vld [vmem:[#allocation11 + $0xf0] sm:$0xff]  ;;  %v198_v47 = vld [vmem:[#allocation11 + $0x108] sm:$0xff] }
 0x11d   :  { %517 = vadd.xlane.f32.xlu1 %v387_v37  ;;  %513 = vadd.xlane.f32.xlu0 %v385_v38  ;;  %v391_v50 = vmul.f32 %v348_v35, %v171_v48  ;;  %v394_v53 = vmul.f32 %v348_v35, %v174_v51  ;;  %v393_v54 = vmul.f32 %v348_v35, %v173_v52  ;;  %v194_v37 = vld [vmem:[#allocation11 + $0xe8] sm:$0xff]  ;;  %v193_v38 = vld [vmem:[#allocation11 + $0xe0] sm:$0xff]  ;;  %v200_v51 = vld [vmem:[#allocation11 + $0x118] sm:$0xff] }
 0x11e   :  { %v396_v58 = vmul.f32 %v348_v35, %v176_v55  ;;  %v395_v59 = vmul.f32 %v348_v35, %v175_v56  ;;  %v398_v63 = vmul.f32 %v348_v35, %v178_v60  ;;  %v397_v1 = vmul.f32 %v348_v35, %v177_v61  ;;  %v197_v48 = vld [vmem:[#allocation11 + $0x100] sm:$0xff]  ;;  %v199_v52 = vld [vmem:[#allocation11 + $0x110] sm:$0xff] }
 0x11f   :  { %v352_v4 = vrot.slane %v2877_v62, %v2867_v27  ;;  %v400_v5 = vmul.f32 %v348_v35, %v180_v2  ;;  %v399_v6 = vmul.f32 %v348_v35, %v179_v3  ;;  %v341_v39 = vcombine.high %v2869_v30, %v2869_v30  ;;  %v201_v55 = vld [vmem:[#allocation11 + $0x120] sm:$0xff] }
 0x121   :  { %519 = vadd.xlane.f32.xlu1 %v388_v41  ;;  %515 = vadd.xlane.f32.xlu0 %v386_v42  ;;  %v402_v9 = vmul.f32 %v352_v4, %v182_v7  ;;  %v401_v10 = vmul.f32 %v352_v4, %v181_v8  ;;  %v404_v13 = vmul.f32 %v352_v4, %v184_v11  ;;  %v196_v42 = vld [vmem:[#allocation11 + $0xf8] sm:$0xff]  ;;  %v210_v8 = vld [vmem:[#allocation11 + $0x168] sm:$0xff] }
 0x122   :  { %v403_v14 = vmul.f32 %v352_v4, %v183_v12  ;;  %v406_v17 = vmul.f32 %v352_v4, %v186_v15  ;;  %v405_v18 = vmul.f32 %v352_v4, %v185_v16  ;;  %v408_v23 = vmul.f32 %v352_v4, %v188_v19  ;;  %v212_v12 = vld [vmem:[#allocation11 + $0x178] sm:$0xff] }
 0x123   :  { %v407_v24 = vmul.f32 %v352_v4, %v187_v21  ;;  %v410_v28 = vmul.f32 %v352_v4, %v190_v25  ;;  %v409_v29 = vmul.f32 %v352_v4, %v189_v26  ;;  %v412_v34 = vmul.f32 %v352_v4, %v192_v31 }
 0x124   :  { %v411_v35 = vmul.f32 %v352_v4, %v191_v33  ;;  %v414_v40 = vmul.f32 %v352_v4, %v194_v37  ;;  %v413_v41 = vmul.f32 %v352_v4, %v193_v38  ;;  %v356_v44 = vrot.slane %v341_v39, %v2867_v27  ;;  %v238_v39 = vld [vmem:[#allocation11 + $0x248] sm:$0xff] }
 0x125   :  { %523 = vadd.xlane.f32.xlu1 %v390_v45  ;;  %521 = vadd.xlane.f32.xlu0 %v389_v46  ;;  %v416_v45 = vmul.f32 %v352_v4, %v196_v42  ;;  %v415_v46 = vmul.f32 %v352_v4, %v195_v43  ;;  %v208_v4 = vld [vmem:[#allocation11 + $0x158] sm:$0xff] }
 0x126   :  { %v420_v30 = vmul.f32 %v356_v44, %v200_v51  ;;  %v421_v57 = vmul.f32 %v356_v44, %v201_v55  ;;  %v432_v15 = vmul.f32 %v356_v44, %v212_v12  ;;  %v240_v43 = vld [vmem:[#allocation11 + $0x258] sm:$0xff] }
 0x129   :  { %527 = vadd.xlane.f32.xlu1 %v392_v49  ;;  %525 = vadd.xlane.f32.xlu0 %v391_v50  ;;  %v418_v49 = vmul.f32 %v356_v44, %v198_v47  ;;  %v417_v50 = vmul.f32 %v356_v44, %v197_v48  ;;  %v242_v47 = vld [vmem:[#allocation11 + $0x268] sm:$0xff]  ;;  %v241_v48 = vld [vmem:[#allocation11 + $0x260] sm:$0xff] }
 0x12d   :  { %531 = vadd.xlane.f32.xlu1 %v394_v53  ;;  %529 = vadd.xlane.f32.xlu0 %v393_v54  ;;  %v419_v53 = vmul.f32 %v356_v44, %v199_v52  ;;  %v202_v54 = vld [vmem:[#allocation11 + $0x128] sm:$0xff]  ;;  %v244_v52 = vld [vmem:[#allocation11 + $0x278] sm:$0xff] }
 0x12e   :  { %v422_v56 = vmul.f32 %v356_v44, %v202_v54 }
 0x131   :  { %535 = vadd.xlane.f32.xlu1 %v396_v58  ;;  %533 = vadd.xlane.f32.xlu0 %v395_v59  ;;  %v204_v58 = vld [vmem:[#allocation11 + $0x138] sm:$0xff]  ;;  %v203_v59 = vld [vmem:[#allocation11 + $0x130] sm:$0xff] }
 0x132   :  { %v424_v60 = vmul.f32 %v356_v44, %v204_v58  ;;  %v423_v61 = vmul.f32 %v356_v44, %v203_v59 }
 0x135   :  { %539 = vadd.xlane.f32.xlu1 %v398_v63  ;;  %537 = vadd.xlane.f32.xlu0 %v397_v1  ;;  %v206_v63 = vld [vmem:[#allocation11 + $0x148] sm:$0xff]  ;;  %v205_v1 = vld [vmem:[#allocation11 + $0x140] sm:$0xff] }
 0x136   :  { %v426_v2 = vmul.f32 %v356_v44, %v206_v63  ;;  %v425_v3 = vmul.f32 %v356_v44, %v205_v1  ;;  %v218_v1 = vld [vmem:[#allocation11 + $0x1a8] sm:$0xff] }
 0x139   :  { %543 = vadd.xlane.f32.xlu1 %v400_v5  ;;  %541 = vadd.xlane.f32.xlu0 %v399_v6  ;;  %v207_v5 = vld [vmem:[#allocation11 + $0x150] sm:$0xff]  ;;  %v428_v6 = vmul.f32 %v356_v44, %v208_v4 }
 0x13a   :  { %v427_v7 = vmul.f32 %v356_v44, %v207_v5 }
 0x13d   :  { %547 = vadd.xlane.f32.xlu1 %v402_v9  ;;  %545 = vadd.xlane.f32.xlu0 %v401_v10  ;;  %v209_v9 = vld [vmem:[#allocation11 + $0x160] sm:$0xff]  ;;  %v430_v10 = vmul.f32 %v356_v44, %v210_v8 }
 0x13e   :  { %v429_v11 = vmul.f32 %v356_v44, %v209_v9  ;;  %v219_v9 = vld [vmem:[#allocation11 + $0x1b0] sm:$0xff] }
 0x141   :  { %551 = vadd.xlane.f32.xlu1 %v404_v13  ;;  %549 = vadd.xlane.f32.xlu0 %v403_v14  ;;  %v211_v13 = vld [vmem:[#allocation11 + $0x170] sm:$0xff]  ;;  %v364_v14 = vrot.slane %v2871_v32, %v2867_v27 }
 0x142   :  { %v431_v16 = vmul.f32 %v356_v44, %v211_v13  ;;  %v239_v44 = vld [vmem:[#allocation11 + $0x250] sm:$0xff] }
 0x143   :  { %v461_v51 = vmul.f32 %v364_v14, %v241_v48  ;;  %v464_v54 = vmul.f32 %v364_v14, %v244_v52 }
 0x145   :  { %555 = vadd.xlane.f32.xlu1 %v406_v17  ;;  %553 = vadd.xlane.f32.xlu0 %v405_v18  ;;  %v230_v17 = vld [vmem:[#allocation11 + $0x208] sm:$0xff]  ;;  %v229_v18 = vld [vmem:[#allocation11 + $0x200] sm:$0xff] }
 0x146   :  { %v450_v19 = vmul.f32 %v364_v14, %v230_v17  ;;  %v449_v21 = vmul.f32 %v364_v14, %v229_v18  ;;  %v221_v17 = vld [vmem:[#allocation11 + $0x1c0] sm:$0xff] }
 0x149   :  { %559 = vadd.xlane.f32.xlu1 %v408_v23  ;;  %557 = vadd.xlane.f32.xlu0 %v407_v24  ;;  %v232_v23 = vld [vmem:[#allocation11 + $0x218] sm:$0xff]  ;;  %v231_v24 = vld [vmem:[#allocation11 + $0x210] sm:$0xff] }
 0x14a   :  { %v452_v25 = vmul.f32 %v364_v14, %v232_v23  ;;  %v451_v26 = vmul.f32 %v364_v14, %v231_v24  ;;  %v224_v24 = vld [vmem:[#allocation11 + $0x1d8] sm:$0xff] }
 0x14d   :  { %563 = vadd.xlane.f32.xlu1 %v410_v28  ;;  %561 = vadd.xlane.f32.xlu0 %v409_v29  ;;  %v234_v28 = vld [vmem:[#allocation11 + $0x228] sm:$0xff]  ;;  %v233_v29 = vld [vmem:[#allocation11 + $0x220] sm:$0xff] }
 0x14e   :  { %v454_v31 = vmul.f32 %v364_v14, %v234_v28  ;;  %v453_v33 = vmul.f32 %v364_v14, %v233_v29 }
 0x151   :  { %567 = vadd.xlane.f32.xlu1 %v412_v34  ;;  %565 = vadd.xlane.f32.xlu0 %v411_v35  ;;  %v236_v34 = vld [vmem:[#allocation11 + $0x238] sm:$0xff]  ;;  %v235_v35 = vld [vmem:[#allocation11 + $0x230] sm:$0xff] }
 0x152   :  { %v456_v37 = vmul.f32 %v364_v14, %v236_v34  ;;  %v455_v38 = vmul.f32 %v364_v14, %v235_v35 }
 0x155   :  { %571 = vadd.xlane.f32.xlu1 %v414_v40  ;;  %569 = vadd.xlane.f32.xlu0 %v413_v41  ;;  %v237_v40 = vld [vmem:[#allocation11 + $0x240] sm:$0xff]  ;;  %v458_v41 = vmul.f32 %v364_v14, %v238_v39 }
 0x156   :  { %v457_v42 = vmul.f32 %v364_v14, %v237_v40 }
 0x159   :  { %575 = vadd.xlane.f32.xlu1 %v416_v45  ;;  %573 = vadd.xlane.f32.xlu0 %v415_v46  ;;  %v460_v45 = vmul.f32 %v364_v14, %v240_v43  ;;  %v459_v46 = vmul.f32 %v364_v14, %v239_v44 }
 0x15d   :  { %579 = vadd.xlane.f32.xlu1 %v418_v49  ;;  %577 = vadd.xlane.f32.xlu0 %v417_v50  ;;  %v343_v49 = vcombine.high %v2877_v62, %v2877_v62  ;;  %v462_v50 = vmul.f32 %v364_v14, %v242_v47  ;;  %v216_v62 = vld [vmem:[#allocation11 + $0x198] sm:$0xff] }
 0x161   :  { %583 = vadd.xlane.f32.xlu1 %v420_v30  ;;  %581 = vadd.xlane.f32.xlu0 %v419_v53  ;;  %v243_v30 = vld [vmem:[#allocation11 + $0x270] sm:$0xff]  ;;  %v2889_v53 = vrot.slane %v343_v49, %v2867_v27 }
 0x162   :  { %v463_v55 = vmul.f32 %v364_v14, %v243_v30 }
 0x163   :  { %v438_v4 = vmul.f32 %v2889_v53, %v218_v1  ;;  %v439_v14 = vmul.f32 %v2889_v53, %v219_v9  ;;  %v441_v29 = vmul.f32 %v2889_v53, %v221_v17  ;;  %v228_v1 = vld [vmem:[#allocation11 + $0x1f8] sm:$0xff]  ;;  %v2965_v9 = vrot.slane %v2875_v36, %v2867_v27 }
 0x165   :  { %587 = vadd.xlane.f32.xlu1 %v422_v56  ;;  %585 = vadd.xlane.f32.xlu0 %v421_v57  ;;  %v214_v56 = vld [vmem:[#allocation11 + $0x188] sm:$0xff]  ;;  %v213_v57 = vld [vmem:[#allocation11 + $0x180] sm:$0xff] }
 0x166   :  { %v434_v58 = vmul.f32 %v2889_v53, %v214_v56  ;;  %v433_v59 = vmul.f32 %v2889_v53, %v213_v57 }
 0x169   :  { %591 = vadd.xlane.f32.xlu1 %v424_v60  ;;  %589 = vadd.xlane.f32.xlu0 %v423_v61  ;;  %v215_v60 = vld [vmem:[#allocation11 + $0x190] sm:$0xff]  ;;  %v436_v61 = vmul.f32 %v2889_v53, %v216_v62 }
 0x16a   :  { %v435_v63 = vmul.f32 %v2889_v53, %v215_v60 }
 0x16d   :  { %595 = vadd.xlane.f32.xlu1 %v426_v2  ;;  %593 = vadd.xlane.f32.xlu0 %v425_v3  ;;  %v217_v2 = vld [vmem:[#allocation11 + $0x1a0] sm:$0xff]  ;;  %v2896_v3 = vand.u32 127, %v300_v20 }
 0x16e   :  { %v437_v5 = vmul.f32 %v2889_v53, %v217_v2  ;;  %v227_v2 = vld [vmem:[#allocation11 + $0x1f0] sm:$0xff] }
 0x16f   :  { %v911_v8 = vadd.s32 4294967280, %v2896_v3  ;;  %v2905_v20 = vsub.s32 %v2896_v3, %v2863_v22  ;;  %v932_v18 = vadd.s32 4294967256, %v2896_v3  ;;  %v939_v34 = vadd.s32 4294967248, %v2896_v3 }
 0x170   :  { %v960_v52 = vadd.s32 4294967224, %v2896_v3  ;;  %v953_v56 = vadd.s32 4294967232, %v2896_v3 }
 0x171   :  { %599 = vadd.xlane.f32.xlu1 %v428_v6  ;;  %597 = vadd.xlane.f32.xlu0 %v427_v7  ;;  %v220_v6 = vld [vmem:[#allocation11 + $0x1b8] sm:$0xff]  ;;  %v904_v7 = vadd.s32 4294967288, %v2896_v3  ;;  %v2942_v49 = vsub.s32 %v939_v34, %v2863_v22 }
 0x172   :  { %v440_v13 = vmul.f32 %v2889_v53, %v220_v6 }
 0x175   :  { %603 = vadd.xlane.f32.xlu1 %v430_v10  ;;  %601 = vadd.xlane.f32.xlu0 %v429_v11  ;;  %v918_v10 = vadd.s32 4294967272, %v2896_v3 }
 0x177   :  { %v2918_v23 = vsub.s32 %v918_v10, %v2863_v22 }
 0x179   :  { %607 = vadd.xlane.f32.xlu1 %v432_v15  ;;  %605 = vadd.xlane.f32.xlu0 %v431_v16  ;;  %v2910_v15 = vsub.s32 %v904_v7, %v2863_v22  ;;  %v222_v16 = vld [vmem:[#allocation11 + $0x1c8] sm:$0xff]  ;;  %v2960_v7 = vsub.s32 %v953_v56, %v2863_v22 }
 0x17a   :  { %v442_v28 = vmul.f32 %v2889_v53, %v222_v16 }
 0x17d   :  { %643 = vadd.xlane.f32.xlu1 %v450_v19  ;;  %641 = vadd.xlane.f32.xlu0 %v449_v21  ;;  %v925_v19 = vadd.s32 4294967264, %v2896_v3  ;;  %v2915_v21 = vsub.s32 %v911_v8, %v2863_v22  ;;  %v967_v8 = vadd.s32 4294967216, %v2896_v3 }
 0x17f   :  { %v2930_v39 = vsub.s32 %v925_v19, %v2863_v22  ;;  %v245_v19 = vld [vmem:[#allocation11 + $0x280] sm:$0xff] }
 0x181   :  { %647 = vadd.xlane.f32.xlu1 %v452_v25  ;;  %645 = vadd.xlane.f32.xlu0 %v451_v26 }
 0x185   :  { %651 = vadd.xlane.f32.xlu1 %v454_v31  ;;  %649 = vadd.xlane.f32.xlu0 %v453_v33  ;;  %v223_v31 = vld [vmem:[#allocation11 + $0x1d0] sm:$0xff]  ;;  %v946_v33 = vadd.s32 4294967240, %v2896_v3 }
 0x186   :  { %v443_v44 = vmul.f32 %v2889_v53, %v223_v31 }
 0x187   :  { %v2939_v48 = vsub.s32 %v946_v33, %v2863_v22  ;;  %v465_v33 = vmul.f32 %v2965_v9, %v245_v19 }
 0x189   :  { %655 = vadd.xlane.f32.xlu1 %v456_v37  ;;  %653 = vadd.xlane.f32.xlu0 %v455_v38  ;;  %v2927_v38 = vsub.s32 %v932_v18, %v2863_v22  ;;  %v246_v18 = vld [vmem:[#allocation11 + $0x288] sm:$0xff] }
 0x18a   :  { %v466_v31 = vmul.f32 %v2965_v9, %v246_v18 }
 0x18d   :  { %659 = vadd.xlane.f32.xlu1 %v458_v41  ;;  %657 = vadd.xlane.f32.xlu0 %v457_v42  ;;  %v444_v41 = vmul.f32 %v2889_v53, %v224_v24  ;;  %v988_v24 = vadd.s32 4294967192, %v2896_v3 }
 0x191   :  { %663 = vadd.xlane.f32.xlu1 %v460_v45  ;;  %661 = vadd.xlane.f32.xlu0 %v459_v46 }
 0x195   :  { %667 = vadd.xlane.f32.xlu1 %v462_v50  ;;  %665 = vadd.xlane.f32.xlu0 %v461_v51  ;;  %v226_v50 = vld [vmem:[#allocation11 + $0x1e8] sm:$0xff]  ;;  %v225_v51 = vld [vmem:[#allocation11 + $0x1e0] sm:$0xff] }
 0x199   :  { %671 = vadd.xlane.f32.xlu1 %v464_v54  ;;  %669 = vadd.xlane.f32.xlu0 %v463_v55 }
 0x19d   :  { %611 = vadd.xlane.f32.xlu1 %v434_v58  ;;  %609 = vadd.xlane.f32.xlu0 %v433_v59  ;;  %v446_v58 = vmul.f32 %v2889_v53, %v226_v50  ;;  %v445_v59 = vmul.f32 %v2889_v53, %v225_v51 }
 0x1a1   :  { %615 = vadd.xlane.f32.xlu1 %v436_v61  ;;  %613 = vadd.xlane.f32.xlu0 %v435_v63  ;;  %v2954_v63 = vsub.s32 %v960_v52, %v2863_v22 }
 0x1a5   :  { %619 = vadd.xlane.f32.xlu1 %v438_v4  ;;  %617 = vadd.xlane.f32.xlu0 %v437_v5  ;;  %v974_v4 = vadd.s32 4294967208, %v2896_v3 }
 0x1a6   :  { %v518_v11 = vpop.xlane.xlu1 %517  ;;  %v514_v12 = vpop.xlane.xlu0 %513 }
 0x1a7   :  { %v903_v35 = vrot.slane %v514_v12, %v2905_v20  ;;  %v915_v40 = vrot.slane %v518_v11, %v2915_v21  ;;  %v448_v11 = vmul.f32 %v2889_v53, %v228_v1  ;;  %v447_v12 = vmul.f32 %v2889_v53, %v227_v2 }
 0x1a8   :  { %v2972_v17 = vsub.s32 %v974_v4, %v2863_v22  ;;  %v981_v53 = vadd.s32 4294967200, %v2896_v3 }
 0x1a9   :  { %623 = vadd.xlane.f32.xlu1 %v440_v13  ;;  %621 = vadd.xlane.f32.xlu0 %v439_v14 }
 0x1aa   :  { %v520_v25 = vpop.xlane.xlu1 %519  ;;  %v516_v26 = vpop.xlane.xlu0 %515 }
 0x1ab   :  { %v908_v37 = vrot.slane %v516_v26, %v2910_v15  ;;  %v922_v42 = vrot.slane %v520_v25, %v2918_v23 }
 0x1ad   :  { %v910_v43 = vsel %vm909_vm1, %v908_v37, %v903_v35  ;;  %627 = vadd.xlane.f32.xlu1 %v442_v28  ;;  %625 = vadd.xlane.f32.xlu0 %v441_v29  ;;  %v2978_v28 = vsub.s32 %v967_v8, %v2863_v22 }
 0x1ae   :  { %v917_v45 = vsel %vm916_vm2, %v915_v40, %v910_v43  ;;  %v524_v46 = vpop.xlane.xlu1 %523  ;;  %v522_v47 = vpop.xlane.xlu0 %521  ;;  %v2986_v40 = vsub.s32 %v988_v24, %v2863_v22 }
 0x1af   :  { %v936_v30 = vrot.slane %v524_v46, %v2927_v38  ;;  %v924_v54 = vsel %vm923_vm3, %v922_v42, %v917_v45  ;;  %v929_v55 = vrot.slane %v522_v47, %v2930_v39  ;;  %v1002_v42 = vadd.s32 4294967176, %v2896_v3  ;;  %v247_v46 = vld [vmem:[#allocation11 + $0x290] sm:$0xff] }
 0x1b0   :  { %v2992_v45 = vsub.s32 %v981_v53, %v2863_v22  ;;  %v995_v47 = vadd.s32 4294967184, %v2896_v3  ;;  %v262_v53 = vld [vmem:[#allocation11 + $0x308] sm:$0xff] }
 0x1b1   :  { %v931_v57 = vsel %vm930_vm4, %v929_v55, %v924_v54  ;;  %631 = vadd.xlane.f32.xlu1 %v444_v41  ;;  %629 = vadd.xlane.f32.xlu0 %v443_v44  ;;  %v248_v41 = vld [vmem:[#allocation11 + $0x298] sm:$0xff]  ;;  %v467_v55 = vmul.f32 %v2965_v9, %v247_v46  ;;  %v3000_v56 = vsub.s32 %v1002_v42, %v2863_v22 }
 0x1b2   :  { %v528_v62 = vpop.xlane.xlu1 %527  ;;  %v938_v60 = vsel %vm937_vm5, %v936_v30, %v931_v57  ;;  %v526_v61 = vpop.xlane.xlu0 %525  ;;  %v468_v51 = vmul.f32 %v2965_v9, %v248_v41 }
 0x1b3   :  { %v950_v5 = vrot.slane %v528_v62, %v2939_v48  ;;  %v943_v6 = vrot.slane %v526_v61, %v2942_v49  ;;  %v249_v62 = vld [vmem:[#allocation11 + $0x2a0] sm:$0xff]  ;;  %v342_v61 = vcombine.high %v2871_v32, %v2871_v32 }
 0x1b5   :  { %v945_v10 = vsel %vm944_vm6, %v943_v6, %v938_v60  ;;  %635 = vadd.xlane.f32.xlu1 %v446_v58  ;;  %633 = vadd.xlane.f32.xlu0 %v445_v59  ;;  %v3005_v58 = vsub.s32 %v995_v47, %v2863_v22  ;;  %v250_v59 = vld [vmem:[#allocation11 + $0x2a8] sm:$0xff]  ;;  %v3017_v32 = vrot.slane %v342_v61, %v2867_v27 }
 0x1b6   :  { %v532_v13 = vpop.xlane.xlu1 %531  ;;  %v952_v14 = vsel %vm951_vm7, %v950_v5, %v945_v10  ;;  %v530_v16 = vpop.xlane.xlu0 %529  ;;  %v470_v5 = vmul.f32 %v2965_v9, %v250_v59  ;;  %v469_v10 = vmul.f32 %v2965_v9, %v249_v62 }
 0x1b7   :  { %v964_v25 = vrot.slane %v532_v13, %v2954_v63  ;;  %v957_v26 = vrot.slane %v530_v16, %v2960_v7  ;;  %v482_v41 = vmul.f32 %v3017_v32, %v262_v53 }
 0x1b9   :  { %v959_v29 = vsel %vm958_vm8, %v957_v26, %v952_v14  ;;  %639 = vadd.xlane.f32.xlu1 %v448_v11  ;;  %637 = vadd.xlane.f32.xlu0 %v447_v12  ;;  %v252_v11 = vld [vmem:[#allocation11 + $0x2b8] sm:$0xff]  ;;  %v251_v12 = vld [vmem:[#allocation11 + $0x2b0] sm:$0xff] }
 0x1ba   :  { %v536_v34 = vpop.xlane.xlu1 %535  ;;  %v966_v35 = vsel %vm965_vm9, %v964_v25, %v959_v29  ;;  %v534_v37 = vpop.xlane.xlu0 %533  ;;  %v472_v25 = vmul.f32 %v2965_v9, %v252_v11  ;;  %v471_v26 = vmul.f32 %v2965_v9, %v251_v12  ;;  %v261_v29 = vld [vmem:[#allocation11 + $0x300] sm:$0xff] }
 0x1bb   :  { %v978_v43 = vrot.slane %v536_v34, %v2972_v17  ;;  %v971_v44 = vrot.slane %v534_v37, %v2978_v28  ;;  %v481_v42 = vmul.f32 %v3017_v32, %v261_v29 }
 0x1bd   :  { %v973_v50 = vsel %vm972_vm10, %v971_v44, %v966_v35  ;;  %675 = vadd.xlane.f32.xlu1 %v466_v31  ;;  %673 = vadd.xlane.f32.xlu0 %v465_v33  ;;  %v263_v44 = vld [vmem:[#allocation11 + $0x310] sm:$0xff] }
 0x1be   :  { %v540_v52 = vpop.xlane.xlu1 %539  ;;  %v980_v30 = vsel %vm979_vm11, %v978_v43, %v973_v50  ;;  %v538_v54 = vpop.xlane.xlu0 %537  ;;  %v264_v43 = vld [vmem:[#allocation11 + $0x318] sm:$0xff] }
 0x1bf   :  { %v992_v57 = vrot.slane %v540_v52, %v2986_v40  ;;  %v985_v3 = vrot.slane %v538_v54, %v2992_v45  ;;  %v484_v54 = vmul.f32 %v3017_v32, %v264_v43  ;;  %v256_v43 = vld [vmem:[#allocation11 + $0x2d8] sm:$0xff] }
 0x1c1   :  { %v987_v60 = vsel %vm986_vm12, %v985_v3, %v980_v30  ;;  %679 = vadd.xlane.f32.xlu1 %v468_v51  ;;  %677 = vadd.xlane.f32.xlu0 %v467_v55  ;;  %v483_v55 = vmul.f32 %v3017_v32, %v263_v44  ;;  %v268_v3 = vld [vmem:[#allocation11 + $0x338] sm:$0xff] }
 0x1c2   :  { %v544_v1 = vpop.xlane.xlu1 %543  ;;  %v994_v2 = vsel %vm993_vm13, %v992_v57, %v987_v60  ;;  %v542_v4 = vpop.xlane.xlu0 %541  ;;  %v265_v57 = vld [vmem:[#allocation11 + $0x320] sm:$0xff] }
 0x1c3   :  { %v1006_v6 = vrot.slane %v544_v1, %v3000_v56  ;;  %v999_v8 = vrot.slane %v542_v4, %v3005_v58  ;;  %v485_v4 = vmul.f32 %v3017_v32, %v265_v57  ;;  %v272_v57 = vld [vmem:[#allocation11 + $0x358] sm:$0xff] }
 0x1c5   :  { %v1001_v13 = vsel %vm1000_vm14, %v999_v8, %v994_v2  ;;  %683 = vadd.xlane.f32.xlu1 %v470_v5  ;;  %681 = vadd.xlane.f32.xlu0 %v469_v10  ;;  %v488_v5 = vmul.f32 %v3017_v32, %v268_v3  ;;  %v254_v8 = vld [vmem:[#allocation11 + $0x2c8] sm:$0xff] }
 0x1c6   :  { %v3020_v14 = vsel %vm1007_vm15, %v1006_v6, %v1001_v13  ;;  %v548_v16 = vpop.xlane.xlu1 %547  ;;  %v546_v18 = vpop.xlane.xlu0 %545  ;;  %v266_v6 = vld [vmem:[#allocation11 + $0x328] sm:$0xff] }
 0x1c7   :  { %v1016_v19 = vrot.slane %v548_v16, %v2910_v15  ;;  %v1012_v24 = vrot.slane %v546_v18, %v2905_v20 }
 0x1c9   :  { %v1017_v31 = vsel %vm909_vm1, %v1016_v19, %v1012_v24  ;;  %687 = vadd.xlane.f32.xlu1 %v472_v25  ;;  %685 = vadd.xlane.f32.xlu0 %v471_v26  ;;  %v486_v19 = vmul.f32 %v3017_v32, %v266_v6  ;;  %v474_v24 = vmul.f32 %v2965_v9, %v254_v8  ;;  %v267_v25 = vld [vmem:[#allocation11 + $0x330] sm:$0xff]  ;;  %v270_v26 = vld [vmem:[#allocation11 + $0x348] sm:$0xff] }
 0x1ca   :  { %v552_v33 = vpop.xlane.xlu1 %551  ;;  %v550_v34 = vpop.xlane.xlu0 %549  ;;  %v258_v6 = vld [vmem:[#allocation11 + $0x2e8] sm:$0xff] }
 0x1cb   :  { %v1026_v35 = vrot.slane %v552_v33, %v2918_v23  ;;  %v1021_v37 = vrot.slane %v550_v34, %v2915_v21 }
 0x1cd   :  { %v1022_v46 = vsel %vm916_vm2, %v1021_v37, %v1017_v31  ;;  %707 = vadd.xlane.f32.xlu1 %v482_v41  ;;  %705 = vadd.xlane.f32.xlu0 %v481_v42  ;;  %v487_v37 = vmul.f32 %v3017_v32, %v267_v25  ;;  %v490_v41 = vmul.f32 %v3017_v32, %v270_v26  ;;  %v253_v42 = vld [vmem:[#allocation11 + $0x2c0] sm:$0xff] }
 0x1ce   :  { %v556_v47 = vpop.xlane.xlu1 %555  ;;  %v1027_v50 = vsel %vm923_vm3, %v1026_v35, %v1022_v46  ;;  %v554_v51 = vpop.xlane.xlu0 %553 }
 0x1cf   :  { %v1036_v52 = vrot.slane %v556_v47, %v2927_v38  ;;  %v1031_v30 = vrot.slane %v554_v51, %v2930_v39 }
 0x1d1   :  { %v1032_v59 = vsel %vm930_vm4, %v1031_v30, %v1027_v50  ;;  %711 = vadd.xlane.f32.xlu1 %v484_v54  ;;  %709 = vadd.xlane.f32.xlu0 %v483_v55  ;;  %v473_v30 = vmul.f32 %v2965_v9, %v253_v42  ;;  %v476_v54 = vmul.f32 %v2965_v9, %v256_v43  ;;  %v269_v55 = vld [vmem:[#allocation11 + $0x340] sm:$0xff]  ;;  %v278_v43 = vld [vmem:[#allocation11 + $0x388] sm:$0xff] }
 0x1d2   :  { %v560_v62 = vpop.xlane.xlu1 %559  ;;  %v1037_v60 = vsel %vm937_vm5, %v1036_v52, %v1032_v59  ;;  %v558_v61 = vpop.xlane.xlu0 %557 }
 0x1d3   :  { %v1046_v1 = vrot.slane %v560_v62, %v2939_v48  ;;  %v1041_v2 = vrot.slane %v558_v61, %v2942_v49 }
 0x1d5   :  { %v1042_v10 = vsel %vm944_vm6, %v1041_v2, %v1037_v60  ;;  %713 = vadd.xlane.f32.xlu1 %v485_v4  ;;  %719 = vadd.xlane.f32.xlu0 %v488_v5  ;;  %v489_v2 = vmul.f32 %v3017_v32, %v269_v55  ;;  %v492_v4 = vmul.f32 %v3017_v32, %v272_v57  ;;  %v255_v5 = vld [vmem:[#allocation11 + $0x2d0] sm:$0xff] }
 0x1d6   :  { %v564_v11 = vpop.xlane.xlu1 %563  ;;  %v1047_v12 = vsel %vm951_vm7, %v1046_v1, %v1042_v10  ;;  %v562_v13 = vpop.xlane.xlu0 %561 }
 0x1d7   :  { %v1056_v16 = vrot.slane %v564_v11, %v2954_v63  ;;  %v1051_v18 = vrot.slane %v562_v13, %v2960_v7 }
 0x1d9   :  { %v1052_v53 = vsel %vm958_vm8, %v1051_v18, %v1047_v12  ;;  %715 = vadd.xlane.f32.xlu1 %v486_v19  ;;  %691 = vadd.xlane.f32.xlu0 %v474_v24  ;;  %v478_v18 = vmul.f32 %v2965_v9, %v258_v6  ;;  %v271_v19 = vld [vmem:[#allocation11 + $0x350] sm:$0xff]  ;;  %v274_v24 = vld [vmem:[#allocation11 + $0x368] sm:$0xff] }
 0x1da   :  { %v568_v29 = vpop.xlane.xlu1 %567  ;;  %v1057_v31 = vsel %vm965_vm9, %v1056_v16, %v1052_v53  ;;  %v566_v33 = vpop.xlane.xlu0 %565  ;;  %v475_v16 = vmul.f32 %v2965_v9, %v255_v5  ;;  %v344_v53 = vcombine.high %v2875_v36, %v2875_v36  ;;  %v273_v36 = vld [vmem:[#allocation11 + $0x360] sm:$0xff] }
 0x1db   :  { %v1066_v34 = vrot.slane %v568_v29, %v2972_v17  ;;  %v1061_v35 = vrot.slane %v566_v33, %v2978_v28  ;;  %v491_v29 = vmul.f32 %v3017_v32, %v271_v19  ;;  %v260_v33 = vld [vmem:[#allocation11 + $0x2f8] sm:$0xff] }
 0x1dc   :  { %v480_v42 = vmul.f32 %v2965_v9, %v260_v33 }
 0x1dd   :  { %v1062_v44 = vsel %vm972_vm10, %v1061_v35, %v1057_v31  ;;  %717 = vadd.xlane.f32.xlu1 %v487_v37  ;;  %723 = vadd.xlane.f32.xlu0 %v490_v41  ;;  %v257_v31 = vld [vmem:[#allocation11 + $0x2e0] sm:$0xff]  ;;  %v3092_v37 = vrot.slane %v344_v53, %v2867_v27 }
 0x1de   :  { %v572_v46 = vpop.xlane.xlu1 %571  ;;  %v1067_v47 = vsel %vm979_vm11, %v1066_v34, %v1062_v44  ;;  %v570_v50 = vpop.xlane.xlu0 %569  ;;  %v477_v41 = vmul.f32 %v2965_v9, %v257_v31 }
 0x1df   :  { %v1076_v51 = vrot.slane %v572_v46, %v2986_v40  ;;  %v1071_v52 = vrot.slane %v570_v50, %v2992_v45  ;;  %v498_v50 = vmul.f32 %v3092_v37, %v278_v43  ;;  %v287_v43 = vld [vmem:[#allocation11 + $0x3d0] sm:$0xff] }
 0x1e1   :  { %v1072_v3 = vsel %vm986_vm12, %v1071_v52, %v1067_v47  ;;  %689 = vadd.xlane.f32.xlu1 %v473_v30  ;;  %695 = vadd.xlane.f32.xlu0 %v476_v54  ;;  %v493_v47 = vmul.f32 %v3017_v32, %v273_v36  ;;  %v279_v52 = vld [vmem:[#allocation11 + $0x390] sm:$0xff]  ;;  %v286_v36 = vld [vmem:[#allocation11 + $0x3c8] sm:$0xff] }
 0x1e2   :  { %v576_v59 = vpop.xlane.xlu1 %575  ;;  %v1077_v62 = vsel %vm993_vm13, %v1076_v51, %v1072_v3  ;;  %v574_v60 = vpop.xlane.xlu0 %573  ;;  %v259_v51 = vld [vmem:[#allocation11 + $0x2f0] sm:$0xff]  ;;  %v499_v57 = vmul.f32 %v3092_v37, %v279_v52  ;;  %v507_v52 = vmul.f32 %v3092_v37, %v287_v43 }
 0x1e3   :  { %v1086_v61 = vrot.slane %v576_v59, %v3000_v56  ;;  %v1081_v1 = vrot.slane %v574_v60, %v3005_v58  ;;  %v479_v55 = vmul.f32 %v2965_v9, %v259_v51  ;;  %v275_v3 = vld [vmem:[#allocation11 + $0x370] sm:$0xff]  ;;  %v280_v59 = vld [vmem:[#allocation11 + $0x398] sm:$0xff]  ;;  %v506_v51 = vmul.f32 %v3092_v37, %v286_v36 }
 0x1e5   :  { %v1082_v8 = vsel %vm1000_vm14, %v1081_v1, %v1077_v62  ;;  %721 = vadd.xlane.f32.xlu1 %v489_v2  ;;  %727 = vadd.xlane.f32.xlu0 %v492_v4  ;;  %v500_v1 = vmul.f32 %v3092_v37, %v280_v59  ;;  %v281_v2 = vld [vmem:[#allocation11 + $0x3a0] sm:$0xff] }
 0x1e6   :  { %v1087_v10 = vsel %vm1007_vm15, %v1086_v61, %v1082_v8  ;;  %v3069_v11 = vpop.xlane.xlu1 %579  ;;  %v3071_v12 = vpop.xlane.xlu0 %577  ;;  %v495_v61 = vmul.f32 %v3017_v32, %v275_v3  ;;  %v277_v4 = vld [vmem:[#allocation11 + $0x380] sm:$0xff]  ;;  %v501_v6 = vmul.f32 %v3092_v37, %v281_v2  ;;  %v290_v2 = vld [vmem:[#allocation11 + $0x3e8] sm:$0xff] }
 0x1e7   :  { %v3075_v13 = vsel %vm3775_vm0, %v1087_v10, %v3020_v14  ;;  %v494_v14 = vmul.f32 %v3017_v32, %v274_v24  ;;  %v497_v8 = vmul.f32 %v3092_v37, %v277_v4  ;;  %v282_v10 = vld [vmem:[#allocation11 + $0x3a8] sm:$0xff]  ;;  %v276_v4 = vld [vmem:[#allocation11 + $0x378] sm:$0xff]  ;;  %vm161_vm0 = vcmask 7168  }
 0x1e8   :  { %3781 = vst [vmem:[#allocation21_spill] sm:$0xff] %v3075_v13  ;;  %v502_v24 = vmul.f32 %v3092_v37, %v282_v10  ;;  %v510_v10 = vmul.f32 %v3092_v37, %v290_v2  ;;  %v2805_v2 = vmov -inf   ;;  %163 = vst.msk [vmem:[#allocation4] sm:$0xff] %vm161_vm0, %v2802_v0 }
 0x1e9   :  { %693 = vadd.xlane.f32.xlu1 %v475_v16  ;;  %699 = vadd.xlane.f32.xlu0 %v478_v18  ;;  %v283_v16 = vld [vmem:[#allocation11 + $0x3b0] sm:$0xff]  ;;  %162 = vst.msk [vmem:[#allocation3] sm:$0xff] %vm161_vm0, %v2805_v2 }
 0x1ea   :  { %v3079_v25 = vpop.xlane.xlu1 %583  ;;  %v3081_v26 = vpop.xlane.xlu0 %581  ;;  %v503_v53 = vmul.f32 %v3092_v37, %v283_v16  ;;  %v496_v16 = vmul.f32 %v3017_v32, %v276_v4 }
 0x1ed   :  { %725 = vadd.xlane.f32.xlu1 %v491_v29  ;;  %731 = vadd.xlane.f32.xlu0 %v494_v14  ;;  %v284_v29 = vld [vmem:[#allocation11 + $0x3b8] sm:$0xff]  ;;  %v285_v14 = vld [vmem:[#allocation11 + $0x3c0] sm:$0xff] }
 0x1ee   :  { %v3087_v34 = vpop.xlane.xlu1 %587  ;;  %v3089_v35 = vpop.xlane.xlu0 %585 }
 0x1f1   :  { %697 = vadd.xlane.f32.xlu1 %v477_v41  ;;  %703 = vadd.xlane.f32.xlu0 %v480_v42  ;;  %v504_v41 = vmul.f32 %v3092_v37, %v284_v29  ;;  %v505_v42 = vmul.f32 %v3092_v37, %v285_v14 }
 0x1f2   :  { %v3096_v44 = vpop.xlane.xlu1 %591  ;;  %v3098_v46 = vpop.xlane.xlu0 %589 }
 0x1f5   :  { %729 = vadd.xlane.f32.xlu1 %v493_v47  ;;  %739 = vadd.xlane.f32.xlu0 %v498_v50 }
 0x1f6   :  { %v3102_v30 = vpop.xlane.xlu1 %595  ;;  %v3104_v54 = vpop.xlane.xlu0 %593 }
 0x1f9   :  { %701 = vadd.xlane.f32.xlu1 %v479_v55  ;;  %741 = vadd.xlane.f32.xlu0 %v499_v57  ;;  %v288_v55 = vld [vmem:[#allocation11 + $0x3d8] sm:$0xff]  ;;  %v289_v57 = vld [vmem:[#allocation11 + $0x3e0] sm:$0xff] }
 0x1fa   :  { %v3108_v62 = vpop.xlane.xlu1 %599  ;;  %v3110_v60 = vpop.xlane.xlu0 %597 }
 0x1fd   :  { %733 = vadd.xlane.f32.xlu1 %v495_v61  ;;  %743 = vadd.xlane.f32.xlu0 %v500_v1  ;;  %v508_v61 = vmul.f32 %v3092_v37, %v288_v55  ;;  %v509_v1 = vmul.f32 %v3092_v37, %v289_v57 }
 0x1fe   :  { %v3114_v5 = vpop.xlane.xlu1 %603  ;;  %v3116_v9 = vpop.xlane.xlu0 %601 }
 0x201   :  { %745 = vadd.xlane.f32.xlu0 %v501_v6  ;;  %737 = vadd.xlane.f32.xlu1 %v497_v8 }
 0x202   :  { %v3120_v18 = vpop.xlane.xlu1 %607  ;;  %v3122_v19 = vpop.xlane.xlu0 %605 }
 0x205   :  { %747 = vadd.xlane.f32.xlu0 %v502_v24  ;;  %749 = vadd.xlane.f32.xlu1 %v503_v53  ;;  %v291_v24 = vld [vmem:[#allocation11 + $0x3f0] sm:$0xff]  ;;  %v292_v53 = vld [vmem:[#allocation11 + $0x3f8] sm:$0xff] }
 0x206   :  { %v3126_v31 = vpop.xlane.xlu1 %643  ;;  %v3128_v33 = vpop.xlane.xlu0 %641 }
 0x209   :  { %751 = vadd.xlane.f32.xlu0 %v504_v41  ;;  %753 = vadd.xlane.f32.xlu1 %v505_v42  ;;  %v511_v41 = vmul.f32 %v3092_v37, %v291_v24  ;;  %v512_v42 = vmul.f32 %v3092_v37, %v292_v53 }
 0x20a   :  { %v3132_v47 = vpop.xlane.xlu1 %647  ;;  %v3134_v50 = vpop.xlane.xlu0 %645 }
 0x20d   :  { %755 = vadd.xlane.f32.xlu0 %v506_v51  ;;  %757 = vadd.xlane.f32.xlu1 %v507_v52 }
 0x20e   :  { %v3138_v3 = vpop.xlane.xlu1 %651  ;;  %v3140_v59 = vpop.xlane.xlu0 %649 }
 0x211   :  { %759 = vadd.xlane.f32.xlu0 %v508_v61  ;;  %761 = vadd.xlane.f32.xlu1 %v509_v1 }
 0x212   :  { %v3144_v6 = vpop.xlane.xlu1 %655  ;;  %v3146_v8 = vpop.xlane.xlu0 %653 }
 0x215   :  { %763 = vadd.xlane.f32.xlu0 %v510_v10  ;;  %735 = vadd.xlane.f32.xlu1 %v496_v16 }
 0x216   :  { %v3150_v29 = vpop.xlane.xlu1 %659  ;;  %v3152_v14 = vpop.xlane.xlu0 %657 }
 0x217   :  { %3782 = vst [vmem:[#allocation22_spill] sm:$0xff] %v3150_v29 }
 0x219   :  { %765 = vadd.xlane.f32.xlu0 %v511_v41  ;;  %767 = vadd.xlane.f32.xlu1 %v512_v42 }
 0x21a   :  { %v3156_v36 = vpop.xlane.xlu1 %663  ;;  %v3158_v43 = vpop.xlane.xlu0 %661 }
 0x21b   :  { %3783 = vst [vmem:[#allocation23_spill] sm:$0xff] %v3156_v36  ;;  %3784 = vst [vmem:[#allocation24_spill] sm:$0xff] %v3158_v43 }
 0x21e   :  { %v3160_v51 = vpop.xlane.xlu1 %667  ;;  %v3162_v32 = vpop.xlane.xlu0 %665 }
 0x21f   :  { %3785 = vst [vmem:[#allocation25_spill] sm:$0xff] %v3160_v51  ;;  %3786 = vst [vmem:[#allocation26_spill] sm:$0xff] %v3162_v32 }
 0x222   :  { %v3164_v52 = vpop.xlane.xlu1 %671  ;;  %v3166_v55 = vpop.xlane.xlu0 %669 }
 0x223   :  { %3787 = vst [vmem:[#allocation27_spill] sm:$0xff] %v3164_v52  ;;  %3788 = vst [vmem:[#allocation28_spill] sm:$0xff] %v3166_v55 }
 0x226   :  { %v3168_v57 = vpop.xlane.xlu1 %611  ;;  %v3170_v61 = vpop.xlane.xlu0 %609 }
 0x22a   :  { %v3172_v37 = vpop.xlane.xlu1 %615  ;;  %v3174_v1 = vpop.xlane.xlu0 %613 }
 0x22e   :  { %v3179_v4 = vpop.xlane.xlu1 %619  ;;  %v3181_v10 = vpop.xlane.xlu0 %617 }
 0x232   :  { %v3183_v16 = vpop.xlane.xlu1 %623  ;;  %v3185_v24 = vpop.xlane.xlu0 %621 }
 0x236   :  { %v3187_v53 = vpop.xlane.xlu1 %627  ;;  %v3189_v41 = vpop.xlane.xlu0 %625 }
 0x237   :  { %3789 = vst [vmem:[#allocation29_spill] sm:$0xff] %v3187_v53 }
 0x23a   :  { %v3191_v42 = vpop.xlane.xlu1 %631  ;;  %v3193_v22 = vpop.xlane.xlu0 %629 }
 0x23b   :  { %3790 = vst [vmem:[#allocation30_spill] sm:$0xff] %v3191_v42  ;;  %3791 = vst [vmem:[#allocation31_spill] sm:$0xff] %v3193_v22 }
 0x23e   :  { %v3195_v2 = vpop.xlane.xlu1 %635  ;;  %v3197_v27 = vpop.xlane.xlu0 %633 }
 0x23f   :  { %3792 = vst [vmem:[#allocation32_spill] sm:$0xff] %v3195_v2  ;;  %3793 = vst [vmem:[#allocation33_spill] sm:$0xff] %v3197_v27 }
 0x242   :  { %v3199_v0 = vpop.xlane.xlu1 %639  ;;  %v3201_v13 = vpop.xlane.xlu0 %637 }
 0x243   :  { %3794 = vst [vmem:[#allocation34_spill] sm:$0xff] %v3199_v0  ;;  %3795 = vst [vmem:[#allocation35_spill] sm:$0xff] %v3201_v13 }
 0x246   :  { %v3203_v52 = vpop.xlane.xlu1 %675  ;;  %v3205_v55 = vpop.xlane.xlu0 %673 }
 0x24a   :  { %v3207_v32 = vpop.xlane.xlu1 %679  ;;  %v3209_v51 = vpop.xlane.xlu0 %677 }
 0x24b   :  { %3796 = vst [vmem:[#allocation36_spill] sm:$0xff] %v3207_v32 }
 0x24e   :  { %v3211_v36 = vpop.xlane.xlu1 %683  ;;  %v3213_v42 = vpop.xlane.xlu0 %681 }
 0x24f   :  { %3797 = vst [vmem:[#allocation37_spill] sm:$0xff] %v3211_v36  ;;  %3798 = vst [vmem:[#allocation38_spill] sm:$0xff] %v3213_v42 }
 0x252   :  { %v3215_v22 = vpop.xlane.xlu1 %687  ;;  %v3217_v2 = vpop.xlane.xlu0 %685 }
 0x253   :  { %3799 = vst [vmem:[#allocation39_spill] sm:$0xff] %v3215_v22  ;;  %3800 = vst [vmem:[#allocation40_spill] sm:$0xff] %v3217_v2  ;;  %v1095_v2 = vrot.slane %v3069_v11, %v2910_v15  ;;  %v1110_v11 = vrot.slane %v3089_v35, %v2930_v39  ;;  %v1125_v35 = vrot.slane %v3096_v44, %v2939_v48 }
 0x254   :  { %v1170_v44 = vrot.slane %v3170_v61, %v2905_v20  ;;  %v1263_v61 = vrot.slane %v3132_v47, %v2918_v23 }
 0x256   :  { %v3219_v27 = vpop.xlane.xlu1 %707  ;;  %v3221_v0 = vpop.xlane.xlu0 %705 }
 0x25a   :  { %v3223_v13 = vpop.xlane.xlu1 %711  ;;  %v3225_v53 = vpop.xlane.xlu0 %709 }
 0x25b   :  { %3801 = vst [vmem:[#allocation41_spill] sm:$0xff] %v3223_v13  ;;  %3802 = vst [vmem:[#allocation42_spill] sm:$0xff] %v3225_v53  ;;  %v1091_v13 = vrot.slane %v3071_v12, %v2905_v20  ;;  %v1100_v53 = vrot.slane %v3081_v26, %v2915_v21  ;;  %v1115_v26 = vrot.slane %v3087_v34, %v2927_v38 }
 0x25c   :  { %v1130_v34 = vrot.slane %v3104_v54, %v2960_v7  ;;  %v1135_v54 = vrot.slane %v3102_v30, %v2954_v63  ;;  %v1268_v30 = vrot.slane %v3140_v59, %v2930_v39 }
 0x25e   :  { %v3227_v43 = vpop.xlane.xlu1 %713  ;;  %v3229_v32 = vpop.xlane.xlu0 %719 }
 0x25f   :  { %3803 = vst [vmem:[#allocation43_spill] sm:$0xff] %v3227_v43  ;;  %3804 = vst [vmem:[#allocation44_spill] sm:$0xff] %v3229_v32 }
 0x262   :  { %v3231_v29 = vpop.xlane.xlu1 %715  ;;  %v3233_v36 = vpop.xlane.xlu0 %691 }
 0x263   :  { %3805 = vst [vmem:[#allocation45_spill] sm:$0xff] %v3231_v29  ;;  %3806 = vst [vmem:[#allocation46_spill] sm:$0xff] %v3233_v36  ;;  %v1096_v29 = vsel %vm909_vm1, %v1095_v2, %v1091_v13  ;;  %v1105_v36 = vrot.slane %v3079_v25, %v2918_v23  ;;  %v1120_v13 = vrot.slane %v3098_v46, %v2942_v49 }
 0x264   :  { %v1249_v46 = vrot.slane %v3128_v33, %v2905_v20  ;;  %v1179_v33 = vrot.slane %v3174_v1, %v2915_v21  ;;  %v1184_v1 = vrot.slane %v3172_v37, %v2918_v23  ;;  %v1273_v37 = vrot.slane %v3138_v3, %v2927_v38 }
 0x266   :  { %v3235_v42 = vpop.xlane.xlu1 %717  ;;  %v3237_v22 = vpop.xlane.xlu0 %723 }
 0x267   :  { %3807 = vst [vmem:[#allocation47_spill] sm:$0xff] %v3235_v42  ;;  %3808 = vst [vmem:[#allocation48_spill] sm:$0xff] %v3237_v22  ;;  %v1101_v22 = vsel %vm916_vm2, %v1100_v53, %v1096_v29 }
 0x26a   :  { %v3245_v43 = vpop.xlane.xlu1 %689  ;;  %v3247_v32 = vpop.xlane.xlu0 %695 }
 0x26b   :  { %3809 = vst [vmem:[#allocation49_spill] sm:$0xff] %v3245_v43  ;;  %3810 = vst [vmem:[#allocation50_spill] sm:$0xff] %v3247_v32  ;;  %v1106_v43 = vsel %vm923_vm3, %v1105_v36, %v1101_v22  ;;  %v1253_v22 = vrot.slane %v3126_v31, %v2910_v15  ;;  %v1258_v36 = vrot.slane %v3134_v50, %v2915_v21 }
 0x26c   :  { %v1111_v32 = vsel %vm930_vm4, %v1110_v11, %v1106_v43  ;;  %v1174_v43 = vrot.slane %v3168_v57, %v2910_v15  ;;  %v1140_v57 = vrot.slane %v3110_v60, %v2978_v28  ;;  %v1145_v60 = vrot.slane %v3108_v62, %v2972_v17 }
 0x26d   :  { %v1116_v53 = vsel %vm937_vm5, %v1115_v26, %v1111_v32  ;;  %v1254_v26 = vsel %vm909_vm1, %v1253_v22, %v1249_v46  ;;  %v1189_v22 = vrot.slane %v3181_v10, %v2930_v39  ;;  %v1150_v46 = vrot.slane %v3116_v9, %v2992_v45 }
 0x26e   :  { %v3255_v42 = vpop.xlane.xlu1 %721  ;;  %v3257_v12 = vpop.xlane.xlu0 %727  ;;  %v1121_v2 = vsel %vm944_vm6, %v1120_v13, %v1116_v53  ;;  %v1259_v13 = vsel %vm916_vm2, %v1258_v36, %v1254_v26  ;;  %v1278_v62 = vrot.slane %v3146_v8, %v2942_v49  ;;  %v1155_v9 = vrot.slane %v3114_v5, %v2986_v40 }
 0x26f   :  { %v1126_v31 = vsel %vm951_vm7, %v1125_v35, %v1121_v2  ;;  %v1175_v35 = vsel %vm909_vm1, %v1174_v43, %v1170_v44  ;;  %v1264_v36 = vsel %vm923_vm3, %v1263_v61, %v1259_v13  ;;  %v1194_v44 = vrot.slane %v3179_v4, %v2927_v38 }
 0x270   :  { %v1131_v50 = vsel %vm958_vm8, %v1130_v34, %v1126_v31  ;;  %v1180_v47 = vsel %vm916_vm2, %v1179_v33, %v1175_v35  ;;  %v1269_v43 = vsel %vm930_vm4, %v1268_v30, %v1264_v36  ;;  %v1160_v4 = vrot.slane %v3122_v19, %v3005_v58  ;;  %v3813_v36 = vld [vmem:[#allocation36_spill] sm:$0xff] }
 0x271   :  { %v1136_v34 = vsel %vm965_vm9, %v1135_v54, %v1131_v50  ;;  %v1185_v10 = vsel %vm923_vm3, %v1184_v1, %v1180_v47  ;;  %v1199_v50 = vrot.slane %v3185_v24, %v2942_v49  ;;  %v1274_v26 = vsel %vm937_vm5, %v1273_v37, %v1269_v43  ;;  %v3814_v43 = vld [vmem:[#allocation29_spill] sm:$0xff] }
 0x272   :  { %v3265_v25 = vpop.xlane.xlu1 %693  ;;  %v3267_v29 = vpop.xlane.xlu0 %699  ;;  %v1141_v59 = vsel %vm972_vm10, %v1140_v57, %v1136_v34  ;;  %v1190_v33 = vsel %vm930_vm4, %v1189_v22, %v1185_v10  ;;  %v1283_v57 = vrot.slane %v3144_v6, %v2939_v48  ;;  %v1279_v61 = vsel %vm944_vm6, %v1278_v62, %v1274_v26  ;;  %v3811_v34 = vld [vmem:[#allocation22_spill] sm:$0xff] }
 0x273   :  { %v1146_v3 = vsel %vm979_vm11, %v1145_v60, %v1141_v59  ;;  %v1288_v5 = vrot.slane %v3152_v14, %v2960_v7  ;;  %v1332_v13 = vrot.slane %v3203_v52, %v2910_v15  ;;  %v1328_v24 = vrot.slane %v3205_v55, %v2905_v20  ;;  %v3812_v59 = vld [vmem:[#allocation24_spill] sm:$0xff]  ;;  %v3815_v10 = vld [vmem:[#allocation38_spill] sm:$0xff] }
 0x274   :  { %v1151_v8 = vsel %vm986_vm12, %v1150_v46, %v1146_v3  ;;  %v1204_v30 = vrot.slane %v3183_v16, %v2939_v48  ;;  %v1195_v19 = vsel %vm937_vm5, %v1194_v44, %v1190_v33  ;;  %v1337_v6 = vrot.slane %v3209_v51, %v2915_v21 }
 0x275   :  { %v1156_v60 = vsel %vm993_vm13, %v1155_v9, %v1151_v8  ;;  %v1200_v14 = vsel %vm944_vm6, %v1199_v50, %v1195_v19  ;;  %v1209_v52 = vrot.slane %v3189_v41, %v2960_v7  ;;  %v1165_v55 = vrot.slane %v3120_v18, %v3000_v56 }
 0x276   :  { %v3285_v32 = vpop.xlane.xlu1 %725  ;;  %v3287_v11 = vpop.xlane.xlu0 %731  ;;  %v1161_v16 = vsel %vm1000_vm14, %v1160_v4, %v1156_v60  ;;  %v1293_v47 = vrot.slane %v3811_v34, %v2954_v63  ;;  %v1284_v51 = vsel %vm951_vm7, %v1283_v57, %v1279_v61  ;;  %v1298_v46 = vrot.slane %v3812_v59, %v2978_v28  ;;  %v3816_v61 = vld [vmem:[#allocation31_spill] sm:$0xff]  ;;  %v3821_v34 = vld [vmem:[#allocation40_spill] sm:$0xff] }
 0x277   :  { %v1289_v22 = vsel %vm958_vm8, %v1288_v5, %v1284_v51  ;;  %v1333_v37 = vsel %vm909_vm1, %v1332_v13, %v1328_v24  ;;  %v1342_v41 = vrot.slane %v3813_v36, %v2918_v23  ;;  %v1214_v18 = vrot.slane %v3814_v43, %v2954_v63  ;;  %v3817_v13 = vld [vmem:[#allocation42_spill] sm:$0xff] }
 0x278   :  { %v1205_v62 = vsel %vm951_vm7, %v1204_v30, %v1200_v14  ;;  %v1338_v44 = vsel %vm916_vm2, %v1337_v6, %v1333_v37  ;;  %v1347_v9 = vrot.slane %v3815_v10, %v2930_v39  ;;  %v1411_v8 = vrot.slane %v3219_v27, %v2910_v15  ;;  %v3818_v30 = vld [vmem:[#allocation23_spill] sm:$0xff]  ;;  %v3819_v27 = vld [vmem:[#allocation37_spill] sm:$0xff]  ;;  %v3820_v14 = vld [vmem:[#allocation30_spill] sm:$0xff] }
 0x279   :  { %v1210_v50 = vsel %vm958_vm8, %v1209_v52, %v1205_v62  ;;  %v1407_v4 = vrot.slane %v3221_v0, %v2905_v20  ;;  %v3388_v57 = vsel %vm1007_vm15, %v1165_v55, %v1161_v16  ;;  %v1294_v26 = vsel %vm965_vm9, %v1293_v47, %v1289_v22  ;;  %v3823_v62 = vld [vmem:[#allocation43_spill] sm:$0xff] }
 0x27a   :  { %v3306_v53 = vpop.xlane.xlu1 %697  ;;  %v3308_v2 = vpop.xlane.xlu0 %703  ;;  %v1219_v5 = vrot.slane %v3816_v61, %v2978_v28  ;;  %v1416_v24 = vrot.slane %v3817_v13, %v2915_v21  ;;  %v1303_v19 = vrot.slane %v3818_v30, %v2972_v17  ;;  %v1299_v6 = vsel %vm972_vm10, %v1298_v46, %v1294_v26  ;;  %v3822_v46 = vld [vmem:[#allocation41_spill] sm:$0xff]  ;;  %v3826_v61 = vld [vmem:[#allocation47_spill] sm:$0xff] }
 0x27b   :  { %v1352_v60 = vrot.slane %v3819_v27, %v2927_v38  ;;  %v1343_v0 = vsel %vm923_vm3, %v1342_v41, %v1338_v44  ;;  %v1224_v52 = vrot.slane %v3820_v14, %v2972_v17  ;;  %v1215_v55 = vsel %vm965_vm9, %v1214_v18, %v1210_v50  ;;  %v3824_v50 = vld [vmem:[#allocation45_spill] sm:$0xff] }
 0x27c   :  { %v1348_v16 = vsel %vm930_vm4, %v1347_v9, %v1343_v0  ;;  %v1357_v47 = vrot.slane %v3821_v34, %v2942_v49  ;;  %v1412_v59 = vsel %vm909_vm1, %v1411_v8, %v1407_v4  ;;  %v1421_v37 = vrot.slane %v3822_v46, %v2918_v23  ;;  %v3827_v30 = vld [vmem:[#allocation49_spill] sm:$0xff]  ;;  %v3829_v34 = vld [vmem:[#allocation26_spill] sm:$0xff] }
 0x27d   :  { %v1220_v43 = vsel %vm972_vm10, %v1219_v5, %v1215_v55  ;;  %v1417_v18 = vsel %vm916_vm2, %v1416_v24, %v1412_v59  ;;  %v1426_v44 = vrot.slane %v3823_v62, %v2930_v39  ;;  %v1353_v9 = vsel %vm937_vm5, %v1352_v60, %v1348_v16  ;;  %v3828_v60 = vld [vmem:[#allocation25_spill] sm:$0xff] }
 0x27e   :  { %v3328_v54 = vpop.xlane.xlu1 %729  ;;  %v3330_v31 = vpop.xlane.xlu0 %739  ;;  %v1431_v8 = vrot.slane %v3824_v50, %v2927_v38  ;;  %v1358_v26 = vsel %vm944_vm6, %v1357_v47, %v1353_v9  ;;  %v1436_v5 = vrot.slane %v3826_v61, %v2942_v49  ;;  %v1422_v24 = vsel %vm923_vm3, %v1421_v37, %v1417_v18  ;;  %v3833_v9 = vld [vmem:[#allocation46_spill] sm:$0xff] }
 0x27f   :  { %v1490_v36 = vrot.slane %v3330_v31, %v2910_v15  ;;  %v1367_v27 = vrot.slane %v3827_v30, %v2960_v7  ;;  %v1313_v0 = vrot.slane %v3828_v60, %v2986_v40  ;;  %v1304_v14 = vsel %vm979_vm11, %v1303_v19, %v1299_v6 }
 0x280   :  { %v1427_v55 = vsel %vm930_vm4, %v1426_v44, %v1422_v24  ;;  %v1308_v47 = vrot.slane %v3829_v34, %v2992_v45  ;;  %v1446_v6 = vrot.slane %v3255_v42, %v2960_v7  ;;  %v1377_v44 = vrot.slane %v3265_v25, %v2978_v28  ;;  %v3838_v34 = vld [vmem:[#allocation34_spill] sm:$0xff] }
 0x281   :  { %v1432_v46 = vsel %vm937_vm5, %v1431_v8, %v1427_v55  ;;  %v1372_v50 = vrot.slane %v3833_v9, %v2954_v63  ;;  %v1387_v24 = vrot.slane %v3306_v53, %v2992_v45  ;;  %v3837_v55 = vld [vmem:[#allocation28_spill] sm:$0xff] }
 0x282   :  { %v3356_v35 = vpop.xlane.xlu1 %701  ;;  %v742_v1 = vpop.xlane.xlu0 %741  ;;  %v1437_v37 = vsel %vm944_vm6, %v1436_v5, %v1432_v46 }
 0x283   :  { %v1495_v10 = vrot.slane %v742_v1, %v2915_v21 }
 0x286   :  { %v3380_v3 = vpop.xlane.xlu1 %733  ;;  %v744_v33 = vpop.xlane.xlu0 %743 }
 0x287   :  { %v1500_v4 = vrot.slane %v744_v33, %v2918_v23 }
 0x28a   :  { %v746_v51 = vpop.xlane.xlu0 %745  ;;  %v738_v22 = vpop.xlane.xlu1 %737 }
 0x28b   :  { %v1486_v41 = vrot.slane %v738_v22, %v2905_v20  ;;  %v3825_v20 = vld [vmem:[#allocation39_spill] sm:$0xff]  ;;  %v1505_v23 = vrot.slane %v746_v51, %v2930_v39  ;;  %v3830_v22 = vld [vmem:[#allocation33_spill] sm:$0xff]  ;;  %v1225_v51 = vsel %vm979_vm11, %v1224_v52, %v1220_v43  ;;  %v3832_v52 = vld [vmem:[#allocation32_spill] sm:$0xff] }
 0x28c   :  { %v1362_v31 = vrot.slane %v3825_v20, %v2939_v48  ;;  %v1229_v59 = vrot.slane %v3830_v22, %v2992_v45  ;;  %v1234_v43 = vrot.slane %v3832_v52, %v2986_v40  ;;  %v3834_v20 = vld [vmem:[#allocation35_spill] sm:$0xff]  ;;  %v1476_v52 = vrot.slane %v3380_v3, %v3005_v58 }
 0x28d   :  { %v1491_v15 = vsel %vm909_vm1, %v1490_v36, %v1486_v41  ;;  %v3831_v41 = vld [vmem:[#allocation44_spill] sm:$0xff]  ;;  %vm1564_vm1 = vcmask 1042434   ;;  %v1239_v25 = vrot.slane %v3834_v20, %v3005_v58 }
 0x28e   :  { %v1496_v13 = vsel %vm916_vm2, %v1495_v10, %v1491_v15  ;;  %v748_v21 = vpop.xlane.xlu0 %747  ;;  %v750_v1 = vpop.xlane.xlu1 %749  ;;  %v1363_v19 = vsel %vm951_vm7, %v1362_v31, %v1358_v26  ;;  %v1441_v18 = vrot.slane %v3831_v41, %v2939_v48  ;;  %v1230_v15 = vsel %vm986_vm12, %v1229_v59, %v1225_v51  ;;  %v3835_v31 = vld [vmem:[#allocation48_spill] sm:$0xff] }
 0x28f   :  { %v1501_v33 = vsel %vm923_vm3, %v1500_v4, %v1496_v13  ;;  %v1510_v16 = vrot.slane %v748_v21, %v2927_v38  ;;  %v1368_v62 = vsel %vm958_vm8, %v1367_v27, %v1363_v19  ;;  %v1515_v10 = vrot.slane %v750_v1, %v2942_v49 }
 0x290   :  { %v1506_v39 = vsel %vm930_vm4, %v1505_v23, %v1501_v33  ;;  %v1309_v4 = vsel %vm986_vm12, %v1308_v47, %v1304_v14  ;;  %v1442_v49 = vsel %vm951_vm7, %v1441_v18, %v1437_v37  ;;  %vm1566_vm2 = vcmask 1043459   ;;  %v3836_v33 = vld [vmem:[#allocation50_spill] sm:$0xff]  ;;  %v3839_v18 = vld [vmem:[#allocation27_spill] sm:$0xff] }
 0x291   :  { %v1511_v42 = vsel %vm937_vm5, %v1510_v16, %v1506_v39  ;;  %v1451_v26 = vrot.slane %v3835_v31, %v2954_v63  ;;  %v1447_v61 = vsel %vm958_vm8, %v1446_v6, %v1442_v49  ;;  %v1373_v5 = vsel %vm965_vm9, %v1372_v50, %v1368_v62 }
 0x292   :  { %v752_v38 = vpop.xlane.xlu0 %751  ;;  %v754_v36 = vpop.xlane.xlu1 %753  ;;  %v1378_v1 = vsel %vm972_vm10, %v1377_v44, %v1373_v5  ;;  %v1516_v30 = vsel %vm944_vm6, %v1515_v10, %v1511_v42  ;;  %v1235_v23 = vsel %vm993_vm13, %v1234_v43, %v1230_v15  ;;  %v1382_v60 = vrot.slane %v3836_v33, %v2972_v17  ;;  %v293_v5 = vld [vmem:[#allocation12] sm:$0xff] }
 0x293   :  { %v1520_v8 = vrot.slane %v752_v38, %v2939_v48  ;;  %v1456_v48 = vrot.slane %v3285_v32, %v2978_v28  ;;  %v1525_v27 = vrot.slane %v754_v36, %v2960_v7  ;;  %v1318_v16 = vrot.slane %v3837_v55, %v3005_v58 }
 0x294   :  { %v1244_v47 = vrot.slane %v3838_v34, %v3000_v56  ;;  %v1240_v53 = vsel %vm1000_vm14, %v1239_v25, %v1235_v23  ;;  %v1452_v22 = vsel %vm965_vm9, %v1451_v26, %v1447_v61  ;;  %v1461_v7 = vrot.slane %v3257_v12, %v2972_v17 }
 0x295   :  { %v1521_v14 = vsel %vm951_vm7, %v1520_v8, %v1516_v30  ;;  %v1457_v59 = vsel %vm972_vm10, %v1456_v48, %v1452_v22  ;;  %v1383_v46 = vsel %vm979_vm11, %v1382_v60, %v1378_v1  ;;  %v1397_v19 = vrot.slane %v3356_v35, %v3005_v58 }
 0x296   :  { %v756_v13 = vpop.xlane.xlu0 %755  ;;  %v758_v21 = vpop.xlane.xlu1 %757  ;;  %v1388_v37 = vsel %vm986_vm12, %v1387_v24, %v1383_v46  ;;  %v1526_v6 = vsel %vm958_vm8, %v1525_v27, %v1521_v14  ;;  %v1314_v12 = vsel %vm993_vm13, %v1313_v0, %v1309_v4  ;;  %v1392_v36 = vrot.slane %v3267_v29, %v2986_v40  ;;  %v3840_v4 = vld [vmem:[#allocation21_spill] sm:$0xff] }
 0x297   :  { %v1530_v32 = vrot.slane %v756_v13, %v2954_v63  ;;  %v1466_v63 = vrot.slane %v3328_v54, %v2992_v45  ;;  %v1535_v38 = vrot.slane %v758_v21, %v2978_v28  ;;  %v1323_v62 = vrot.slane %v3839_v18, %v3000_v56 }
 0x298   :  { %v1319_v44 = vsel %vm1000_vm14, %v1318_v16, %v1314_v12  ;;  %v1245_v35 = vsel %vm1007_vm15, %v1244_v47, %v1240_v53  ;;  %v1462_v10 = vsel %vm979_vm11, %v1461_v7, %v1457_v59  ;;  %v1471_v28 = vrot.slane %v3287_v11, %v2986_v40  ;;  %v3841_v59 = vld [vmem:[#allocation20_spill] sm:$0xff] }
 0x299   :  { %v1531_v41 = vsel %vm965_vm9, %v1530_v32, %v1526_v6  ;;  %v1467_v0 = vsel %vm986_vm12, %v1466_v63, %v1462_v10  ;;  %v1393_v29 = vsel %vm993_vm13, %v1392_v36, %v1388_v37  ;;  %v1565_v11 = vsel %vm1564_vm1, %v3388_v57, %v3840_v4  ;;  %v3842_v63 = vld [vmem:[#allocation19_spill] sm:$0xff] }
 0x29a   :  { %v760_v39 = vpop.xlane.xlu0 %759  ;;  %v762_v51 = vpop.xlane.xlu1 %761  ;;  %v1398_v9 = vsel %vm1000_vm14, %v1397_v19, %v1393_v29  ;;  %v1536_v50 = vsel %vm972_vm10, %v1535_v38, %v1531_v41  ;;  %v1402_v15 = vrot.slane %v3308_v2, %v3000_v56  ;;  %v1324_v25 = vsel %vm1007_vm15, %v1323_v62, %v1319_v44  ;;  %v1593_v10 = vld [vmem:[#allocation4] sm:$0xff] }
 0x29b   :  { %v1540_v54 = vrot.slane %v760_v39, %v2972_v17  ;;  %v1545_v42 = vrot.slane %v762_v51, %v2992_v45  ;;  %v1567_v49 = vsel %vm1566_vm2, %v1245_v35, %v1565_v11  ;;  %v1472_v31 = vsel %vm993_vm13, %v1471_v28, %v1467_v0 }
 0x29c   :  { %vm1568_vm3 = vcmask 1044484   ;;  %v1403_v45 = vsel %vm1007_vm15, %v1402_v15, %v1398_v9  ;;  %v1477_v26 = vsel %vm1000_vm14, %v1476_v52, %v1472_v31  ;;  %vm1570_vm4 = vcmask 1045509  }
 0x29d   :  { %v1541_v20 = vsel %vm979_vm11, %v1540_v54, %v1536_v50  ;;  %vm1572_vm5 = vcmask 1046534   ;;  %v1569_v1 = vsel %vm1568_vm3, %v1324_v25, %v1567_v49  ;;  %vm1574_vm6 = vcmask 1047559  }
 0x29e   :  { %v764_v17 = vpop.xlane.xlu0 %763  ;;  %v736_v43 = vpop.xlane.xlu1 %735  ;;  %v1546_v2 = vsel %vm986_vm12, %v1545_v42, %v1541_v20  ;;  %vm769_vm7 = vcmp.ne.f32.partialorder %v293_v5, 0.0  ;;  %v1571_v30 = vsel %vm1570_vm4, %v1403_v45, %v1569_v1  ;;  %v1676_v39 = vsub.s32 1, %v3842_v63 }
 0x29f   :  { %v1481_v8 = vrot.slane %v736_v43, %v3000_v56  ;;  %v1550_v3 = vrot.slane %v764_v17, %v2986_v40  ;;  %v1743_v37 = vsub.s32 2, %v3842_v63  ;;  %v1810_v6 = vsub.s32 3, %v3842_v63 }
 0x2a0   :  { %v1877_v18 = vsub.s32 4, %v3842_v63  ;;  %v2011_v20 = vsub.s32 6, %v3842_v63  ;;  %vm3843_vm8 = vcmask 1041409  }
 0x2a1   :  { %v1482_v40 = vsel %vm1007_vm15, %v1481_v8, %v1477_v26  ;;  %v1551_v21 = vsel %vm993_vm13, %v1550_v3, %v1546_v2  ;;  %v1944_v8 = vsub.s32 5, %v3842_v63  ;;  %v2078_v26 = vsub.s32 7, %v3842_v63  ;;  %v2560_v2 = vld [vmem:[#allocation11 + $0x80] sm:$0xff] }
 0x2a2   :  { %v766_v61 = vpop.xlane.xlu0 %765  ;;  %v768_v57 = vpop.xlane.xlu1 %767  ;;  %v1573_v23 = vsel %vm1572_vm5, %v1482_v40, %v1571_v30 }
 0x2a3   :  { %v1555_v48 = vrot.slane %v766_v61, %v3005_v58  ;;  %v1560_v13 = vrot.slane %v768_v57, %v3000_v56  ;;  %v2806_v58 = vmov 0   ;;  %v1578_v56 = vld [vmem:[#allocation3] sm:$0xff] }
 0x2a4   :  { %2552 = vset.pattern.permute.xlu1 %v2806_v58  ;;  %2553 = vset.pattern.permute.xlu0 %v2806_v58  ;;  %v2564_v58 = vld [vmem:[#allocation11] sm:$0xff] }
 0x2a5   :  { %v1556_v24 = vsel %vm1000_vm14, %v1555_v48, %v1551_v21 }
 0x2a6   :  { %v1561_v27 = vsel %vm1007_vm15, %v1560_v13, %v1556_v24  ;;  %v2561_v13 = vld [vmem:[#allocation11 + $0x88] sm:$0xff] }
 0x2a7   :  { %v1575_v33 = vsel %vm1574_vm6, %v1561_v27, %v1573_v23  ;;  %v2562_v24 = vld [vmem:[#allocation11 + $0x8] sm:$0xff]  ;;  %v2563_v23 = vld [vmem:[#allocation11 + $0x90] sm:$0xff] }
 0x2a8   :  { %v1577_v60 = vsel %vm769_vm7, -1e+16, %v1575_v33 }
 0x2a9   :  { %1579 = vmax.xlane.f32.xlu0 %v1577_v60 }
 0x332   :  { %v1580_v14 = vpop.xlane.xlu0 %1579 }
 0x333   :  { %v1581_v32 = vmax.f32 %v1578_v56, %v1580_v14  ;;  %v2565_v14 = vld [vmem:[#allocation11 + $0x10] sm:$0xff] }
 0x335   :  { %v1582_v55 = vsub.f32 %v1578_v56, %v1581_v32  ;;  %2457 = vst.msk [vmem:[#allocation3] sm:$0xff] %vm161_vm0, %v1581_v32  ;;  %1587 = vperm.xlu1 %2552, %v1581_v32  }
 0x337   :  { %v1583_v16 = vmul.f32 1.442695, %v1582_v55  ;;  %v2566_v55 = vld [vmem:[#allocation11 + $0x98] sm:$0xff] }
 0x339   :  { %2554 = vpow2.f32 %v1583_v16 }
 0x346   :  { %v3544_v34 = vpop.eup %2554 }
 0x347   :  { %1603 = vperm.xlu0 %2553, %v3544_v34   ;;  %v1594_v0 = vmul.f32 %v3544_v34, %v1593_v10  ;;  %v2572_v10 = vld [vmem:[#allocation11 + $0xb0] sm:$0xff] }
 0x3b0   :  { %v1588_v47 = vpop.permute.xlu1 %1587 }
 0x3b1   :  { %v1590_v53 = vsub.f32 %v1577_v60, %v1588_v47 }
 0x3b3   :  { %v1591_v22 = vmul.f32 1.442695, %v1590_v53 }
 0x3b5   :  { %2556 = vpow2.f32 %v1591_v22  ;;  %v2567_v22 = vld [vmem:[#allocation11 + $0x18] sm:$0xff] }
 0x3c2   :  { %v3547_v7 = vpop.eup %2556  ;;  %v3572_v35 = vpop.permute.xlu0 %1603 }
 0x3c3   :  { %1595 = vadd.xlane.f32.xlu0 %v3547_v7  ;;  %v1610_v46 = vrot.slane %v3547_v7, %v3841_v59  ;;  %v1677_v51 = vrot.slane %v3547_v7, %v1676_v39  ;;  %v1744_v19 = vrot.slane %v3547_v7, %v1743_v37  ;;  %v1811_v38 = vrot.slane %v3547_v7, %v1810_v6  ;;  %v2568_v59 = vld [vmem:[#allocation11 + $0xa0] sm:$0xff]  ;;  %v2570_v6 = vld [vmem:[#allocation11 + $0xa8] sm:$0xff] }
 0x3c4   :  { %v3570_v44 = vrot.slane %v3547_v7, %v1877_v18  ;;  %v3601_v15 = vrot.slane %v3547_v7, %v1944_v8  ;;  %v3611_v49 = vrot.slane %v3547_v7, %v2011_v20  ;;  %v3621_v5 = vrot.slane %v3547_v7, %v2078_v26  ;;  %v2569_v37 = vld [vmem:[#allocation11 + $0x20] sm:$0xff]  ;;  %v2571_v18 = vld [vmem:[#allocation11 + $0x28] sm:$0xff]  ;;  %v2574_v26 = vld [vmem:[#allocation11 + $0xb8] sm:$0xff] }
 0x3c5   :  { %1612 = vbcast.lane.b32.xlu1 %v1610_v46, 256 }
 0x3c9   :  { %1616 = vbcast.lane.b32.xlu1 %v1610_v46, 264 }
 0x3cd   :  { %1620 = vbcast.lane.b32.xlu1 %v1610_v46, 272 }
 0x3d1   :  { %1624 = vbcast.lane.b32.xlu1 %v1610_v46, 280 }
 0x3d5   :  { %1628 = vbcast.lane.b32.xlu1 %v1610_v46, 288 }
 0x3d9   :  { %1632 = vbcast.lane.b32.xlu1 %v1610_v46, 296  ;;  %1648 = vbcast.lane.b32.xlu0 %v1610_v46, 328 }
 0x3dd   :  { %1636 = vbcast.lane.b32.xlu1 %v1610_v46, 304  ;;  %1656 = vbcast.lane.b32.xlu0 %v1610_v46, 344 }
 0x3e1   :  { %1640 = vbcast.lane.b32.xlu1 %v1610_v46, 312  ;;  %1664 = vbcast.lane.b32.xlu0 %v1610_v46, 360 }
 0x3e5   :  { %1644 = vbcast.lane.b32.xlu1 %v1610_v46, 320  ;;  %1672 = vbcast.lane.b32.xlu0 %v1610_v46, 376 }
 0x3e9   :  { %1652 = vbcast.lane.b32.xlu1 %v1610_v46, 336  ;;  %1683 = vbcast.lane.b32.xlu0 %v1677_v51, 264 }
 0x3ed   :  { %1660 = vbcast.lane.b32.xlu1 %v1610_v46, 352  ;;  %1691 = vbcast.lane.b32.xlu0 %v1677_v51, 280 }
 0x3f1   :  { %1668 = vbcast.lane.b32.xlu1 %v1610_v46, 368  ;;  %1699 = vbcast.lane.b32.xlu0 %v1677_v51, 296 }
 0x3f5   :  { %1679 = vbcast.lane.b32.xlu1 %v1677_v51, 256  ;;  %1707 = vbcast.lane.b32.xlu0 %v1677_v51, 312 }
 0x3f9   :  { %1687 = vbcast.lane.b32.xlu1 %v1677_v51, 272  ;;  %1715 = vbcast.lane.b32.xlu0 %v1677_v51, 328 }
 0x3fd   :  { %1695 = vbcast.lane.b32.xlu1 %v1677_v51, 288  ;;  %1723 = vbcast.lane.b32.xlu0 %v1677_v51, 344 }
 0x401   :  { %1703 = vbcast.lane.b32.xlu1 %v1677_v51, 304  ;;  %1731 = vbcast.lane.b32.xlu0 %v1677_v51, 360 }
 0x405   :  { %1711 = vbcast.lane.b32.xlu1 %v1677_v51, 320  ;;  %1739 = vbcast.lane.b32.xlu0 %v1677_v51, 376 }
 0x409   :  { %1719 = vbcast.lane.b32.xlu1 %v1677_v51, 336  ;;  %1750 = vbcast.lane.b32.xlu0 %v1744_v19, 264 }
 0x40d   :  { %1727 = vbcast.lane.b32.xlu1 %v1677_v51, 352  ;;  %1758 = vbcast.lane.b32.xlu0 %v1744_v19, 280 }
 0x411   :  { %1735 = vbcast.lane.b32.xlu1 %v1677_v51, 368  ;;  %1766 = vbcast.lane.b32.xlu0 %v1744_v19, 296 }
 0x415   :  { %1746 = vbcast.lane.b32.xlu1 %v1744_v19, 256  ;;  %1774 = vbcast.lane.b32.xlu0 %v1744_v19, 312 }
 0x419   :  { %1754 = vbcast.lane.b32.xlu1 %v1744_v19, 272  ;;  %1782 = vbcast.lane.b32.xlu0 %v1744_v19, 328 }
 0x41d   :  { %1762 = vbcast.lane.b32.xlu1 %v1744_v19, 288  ;;  %1790 = vbcast.lane.b32.xlu0 %v1744_v19, 344 }
 0x421   :  { %1770 = vbcast.lane.b32.xlu1 %v1744_v19, 304  ;;  %1798 = vbcast.lane.b32.xlu0 %v1744_v19, 360 }
 0x425   :  { %1778 = vbcast.lane.b32.xlu1 %v1744_v19, 320  ;;  %1806 = vbcast.lane.b32.xlu0 %v1744_v19, 376 }
 0x429   :  { %1786 = vbcast.lane.b32.xlu1 %v1744_v19, 336  ;;  %1817 = vbcast.lane.b32.xlu0 %v1811_v38, 264 }
 0x42d   :  { %1794 = vbcast.lane.b32.xlu1 %v1744_v19, 352  ;;  %1825 = vbcast.lane.b32.xlu0 %v1811_v38, 280 }
 0x431   :  { %1802 = vbcast.lane.b32.xlu1 %v1744_v19, 368  ;;  %1833 = vbcast.lane.b32.xlu0 %v1811_v38, 296 }
 0x435   :  { %1813 = vbcast.lane.b32.xlu1 %v1811_v38, 256  ;;  %1841 = vbcast.lane.b32.xlu0 %v1811_v38, 312 }
 0x437   :  { %v3558_v12 = vpop.permute.xlu1 %1612 }
 0x438   :  { %v2143_v56 = vmul.f32 %v2564_v58, %v3558_v12  ;;  %v2578_v58 = vld [vmem:[#allocation11 + $0xc8] sm:$0xff] }
 0x439   :  { %1821 = vbcast.lane.b32.xlu1 %v1811_v38, 272  ;;  %1849 = vbcast.lane.b32.xlu0 %v1811_v38, 328 }
 0x43b   :  { %v3560_v36 = vpop.permute.xlu1 %1616 }
 0x43c   :  { %v2144_v30 = vmul.f32 %v2562_v24, %v3560_v36 }
 0x43d   :  { %1829 = vbcast.lane.b32.xlu1 %v1811_v38, 288  ;;  %1857 = vbcast.lane.b32.xlu0 %v1811_v38, 344 }
 0x43e   :  { %v2271_v53 = vadd.f32 %v2144_v30, %v2143_v56  ;;  %v2577_v30 = vld [vmem:[#allocation11 + $0x40] sm:$0xff] }
 0x43f   :  { %v3562_v41 = vpop.permute.xlu1 %1620 }
 0x440   :  { %v2145_v32 = vmul.f32 %v2565_v14, %v3562_v41 }
 0x441   :  { %1837 = vbcast.lane.b32.xlu1 %v1811_v38, 304  ;;  %1865 = vbcast.lane.b32.xlu0 %v1811_v38, 360 }
 0x442   :  { %v2272_v51 = vadd.f32 %v2271_v53, %v2145_v32  ;;  %v2581_v53 = vld [vmem:[#allocation11 + $0x50] sm:$0xff] }
 0x443   :  { %v3564_v54 = vpop.permute.xlu1 %1624 }
 0x444   :  { %v2146_v7 = vmul.f32 %v2567_v22, %v3564_v54 }
 0x445   :  { %1845 = vbcast.lane.b32.xlu1 %v1811_v38, 320  ;;  %1873 = vbcast.lane.b32.xlu0 %v1811_v38, 376 }
 0x446   :  { %v2273_v41 = vadd.f32 %v2272_v51, %v2146_v7 }
 0x447   :  { %v3567_v62 = vpop.permute.xlu1 %1628 }
 0x448   :  { %v2147_v19 = vmul.f32 %v2569_v37, %v3567_v62 }
 0x449   :  { %1853 = vbcast.lane.b32.xlu1 %v1811_v38, 336  ;;  %1884 = vbcast.lane.b32.xlu0 %v3570_v44, 264 }
 0x44a   :  { %v2274_v8 = vadd.f32 %v2273_v41, %v2147_v19  ;;  %v2583_v19 = vld [vmem:[#allocation11 + $0x108] sm:$0xff]  ;;  %v2585_v41 = vld [vmem:[#allocation11 + $0x58] sm:$0xff] }
 0x44b   :  { %v3575_v28 = vpop.permute.xlu1 %1632 }
 0x44c   :  { %v1596_v29 = vpop.xlane.xlu0 %1595  ;;  %v2148_v54 = vmul.f32 %v2571_v18, %v3575_v28  ;;  %v2575_v28 = vld [vmem:[#allocation11 + $0x38] sm:$0xff]  ;;  %v2586_v18 = vld [vmem:[#allocation11 + $0xe0] sm:$0xff] }
 0x44d   :  { %v1597_v52 = vadd.f32 %v1596_v29, %v1594_v0  ;;  %1861 = vbcast.lane.b32.xlu1 %v1811_v38, 352  ;;  %1892 = vbcast.lane.b32.xlu0 %v3570_v44, 280 }
 0x44f   :  { %1599 = vst.msk [vmem:[#allocation4] sm:$0xff] %vm161_vm0, %v1597_v52  ;;  %v3580_v17 = vpop.permute.xlu1 %1636 }
 0x450   :  { %v3582_v43 = vpop.permute.xlu0 %1648 }
 0x451   :  { %1869 = vbcast.lane.b32.xlu1 %v1811_v38, 368  ;;  %1900 = vbcast.lane.b32.xlu0 %v3570_v44, 296 }
 0x453   :  { %v3585_v9 = vpop.permute.xlu1 %1640 }
 0x454   :  { %v3587_v50 = vpop.permute.xlu0 %1656 }
 0x455   :  { %1880 = vbcast.lane.b32.xlu1 %v3570_v44, 256  ;;  %1908 = vbcast.lane.b32.xlu0 %v3570_v44, 312 }
 0x457   :  { %v3591_v42 = vpop.permute.xlu1 %1644 }
 0x458   :  { %v3594_v4 = vpop.permute.xlu0 %1664 }
 0x459   :  { %1888 = vbcast.lane.b32.xlu1 %v3570_v44, 272  ;;  %1916 = vbcast.lane.b32.xlu0 %v3570_v44, 328 }
 0x45b   :  { %v3598_v11 = vpop.permute.xlu1 %1652 }
 0x45c   :  { %v3604_v3 = vpop.permute.xlu0 %1672  ;;  %v2153_v22 = vmul.f32 %v2581_v53, %v3598_v11  ;;  %v2154_v11 = vmul.f32 %v2585_v41, %v3587_v50  ;;  %v2589_v50 = vld [vmem:[#allocation11 + $0x118] sm:$0xff] }
 0x45d   :  { %1896 = vbcast.lane.b32.xlu1 %v3570_v44, 288  ;;  %1947 = vbcast.lane.b32.xlu0 %v3601_v15, 256 }
 0x45f   :  { %v3608_v25 = vpop.permute.xlu1 %1660 }
 0x460   :  { %v1684_v31 = vpop.permute.xlu0 %1683 }
 0x461   :  { %1904 = vbcast.lane.b32.xlu1 %v3570_v44, 304  ;;  %2014 = vbcast.lane.b32.xlu0 %v3611_v49, 256  ;;  %v2160_v21 = vmul.f32 %v2561_v13, %v1684_v31  ;;  %v2573_v31 = vld [vmem:[#allocation11 + $0x30] sm:$0xff]  ;;  %v2576_v13 = vld [vmem:[#allocation11 + $0xc0] sm:$0xff] }
 0x462   :  { %v2149_v62 = vmul.f32 %v2573_v31, %v3580_v17  ;;  %v2151_v17 = vmul.f32 %v2577_v30, %v3591_v42  ;;  %v2588_v31 = vld [vmem:[#allocation11 + $0x110] sm:$0xff] }
 0x463   :  { %v3615_v45 = vpop.permute.xlu1 %1668 }
 0x464   :  { %v1692_v61 = vpop.permute.xlu0 %1691 }
 0x465   :  { %1912 = vbcast.lane.b32.xlu1 %v3570_v44, 320  ;;  %1955 = vbcast.lane.b32.xlu0 %v3601_v15, 272  ;;  %v2162_v16 = vmul.f32 %v2566_v55, %v1692_v61  ;;  %v2579_v55 = vld [vmem:[#allocation11 + $0x48] sm:$0xff] }
 0x467   :  { %v1680_v57 = vpop.permute.xlu1 %1679 }
 0x468   :  { %v2159_v40 = vmul.f32 %v2560_v2, %v1680_v57  ;;  %v1700_v48 = vpop.permute.xlu0 %1699  ;;  %v2275_v2 = vadd.f32 %v2274_v8, %v2148_v54 }
 0x469   :  { %1920 = vbcast.lane.b32.xlu1 %v3570_v44, 336  ;;  %2085 = vbcast.lane.b32.xlu0 %v3621_v5, 264  ;;  %v2164_v38 = vmul.f32 %v2570_v6, %v1700_v48  ;;  %v2150_v48 = vmul.f32 %v2575_v28, %v3585_v9 }
 0x46a   :  { %v2292_v27 = vadd.f32 %v2160_v21, %v2159_v40  ;;  %v2276_v24 = vadd.f32 %v2275_v2, %v2149_v62 }
 0x46b   :  { %v1688_v1 = vpop.permute.xlu1 %1687 }
 0x46c   :  { %v2161_v33 = vmul.f32 %v2563_v23, %v1688_v1  ;;  %v1708_v60 = vpop.permute.xlu0 %1707 }
 0x46d   :  { %1951 = vbcast.lane.b32.xlu1 %v3601_v15, 264  ;;  %1959 = vbcast.lane.b32.xlu0 %v3601_v15, 280  ;;  %v2166_v61 = vmul.f32 %v2574_v26, %v1708_v60 }
 0x46e   :  { %v2293_v34 = vadd.f32 %v2292_v27, %v2161_v33  ;;  %v2277_v33 = vadd.f32 %v2276_v24, %v2150_v48  ;;  %v2590_v48 = vld [vmem:[#allocation11 + $0xe8] sm:$0xff] }
 0x46f   :  { %v1696_v47 = vpop.permute.xlu1 %1695 }
 0x470   :  { %v2163_v46 = vmul.f32 %v2568_v59, %v1696_v47  ;;  %v2294_v63 = vadd.f32 %v2293_v34, %v2162_v16  ;;  %v1716_v39 = vpop.permute.xlu0 %1715  ;;  %v2278_v9 = vadd.f32 %v2277_v33, %v2151_v17  ;;  %v2152_v16 = vmul.f32 %v2579_v55, %v3582_v43  ;;  %v2580_v34 = vld [vmem:[#allocation11 + $0xd0] sm:$0xff]  ;;  %v2582_v43 = vld [vmem:[#allocation11 + $0xd8] sm:$0xff]  ;;  %v2592_v17 = vld [vmem:[#allocation11 + $0x68] sm:$0xff] }
 0x471   :  { %2018 = vbcast.lane.b32.xlu1 %v3611_v49, 264  ;;  %2026 = vbcast.lane.b32.xlu0 %v3611_v49, 280  ;;  %v2168_v56 = vmul.f32 %v2578_v58, %v1716_v39  ;;  %v2593_v33 = vld [vmem:[#allocation11 + $0xf0] sm:$0xff]  ;;  %v2594_v58 = vld [vmem:[#allocation11 + $0x128] sm:$0xff] }
 0x472   :  { %v2295_v12 = vadd.f32 %v2294_v63, %v2163_v46  ;;  %v2279_v7 = vadd.f32 %v2278_v9, %v2152_v16 }
 0x473   :  { %v1704_v36 = vpop.permute.xlu1 %1703 }
 0x474   :  { %v2165_v0 = vmul.f32 %v2572_v10, %v1704_v36  ;;  %v2296_v29 = vadd.f32 %v2295_v12, %v2164_v38  ;;  %v1724_v52 = vpop.permute.xlu0 %1723  ;;  %v2280_v39 = vadd.f32 %v2279_v7, %v2153_v22  ;;  %v2584_v38 = vld [vmem:[#allocation11 + $0x100] sm:$0xff]  ;;  %v2597_v22 = vld [vmem:[#allocation11 + $0x138] sm:$0xff] }
 0x475   :  { %2081 = vbcast.lane.b32.xlu1 %v3621_v5, 256  ;;  %2093 = vbcast.lane.b32.xlu0 %v3621_v5, 280  ;;  %v2170_v51 = vmul.f32 %v2582_v43, %v1724_v52 }
 0x476   :  { %v2297_v20 = vadd.f32 %v2296_v29, %v2165_v0  ;;  %v2587_v29 = vld [vmem:[#allocation11 + $0x60] sm:$0xff]  ;;  %v2281_v8 = vadd.f32 %v2280_v39, %v2154_v11 }
 0x477   :  { %v1712_v57 = vpop.permute.xlu1 %1711  ;;  %v2155_v52 = vmul.f32 %v2587_v29, %v3608_v25 }
 0x478   :  { %v3638_v40 = vpop.permute.xlu0 %1731  ;;  %v2167_v21 = vmul.f32 %v2576_v13, %v1712_v57  ;;  %v2298_v1 = vadd.f32 %v2297_v20, %v2166_v61 }
 0x479   :  { %2022 = vbcast.lane.b32.xlu1 %v3611_v49, 272  ;;  %1967 = vbcast.lane.b32.xlu0 %v3601_v15, 296  ;;  %v2282_v28 = vadd.f32 %v2281_v8, %v2155_v52  ;;  %v2172_v13 = vmul.f32 %v2590_v48, %v3638_v40 }
 0x47a   :  { %v2299_v60 = vadd.f32 %v2298_v1, %v2167_v21  ;;  %v2591_v1 = vld [vmem:[#allocation11 + $0x120] sm:$0xff] }
 0x47b   :  { %v1720_v27 = vpop.permute.xlu1 %1719 }
 0x47c   :  { %v3644_v23 = vpop.permute.xlu0 %1739  ;;  %v2169_v47 = vmul.f32 %v2580_v34, %v1720_v27  ;;  %v2300_v42 = vadd.f32 %v2299_v60, %v2168_v56  ;;  %v2156_v27 = vmul.f32 %v2592_v17, %v3594_v4  ;;  %v2596_v34 = vld [vmem:[#allocation11 + $0x130] sm:$0xff] }
 0x47d   :  { %2089 = vbcast.lane.b32.xlu1 %v3621_v5, 272  ;;  %2034 = vbcast.lane.b32.xlu0 %v3611_v49, 296 }
 0x47e   :  { %v2301_v63 = vadd.f32 %v2300_v42, %v2169_v47  ;;  %v2283_v55 = vadd.f32 %v2282_v28, %v2156_v27  ;;  %v2605_v28 = vld [vmem:[#allocation11 + $0x168] sm:$0xff] }
 0x47f   :  { %v1728_v14 = vpop.permute.xlu1 %1727 }
 0x480   :  { %v1751_v32 = vpop.permute.xlu0 %1750  ;;  %v2171_v54 = vmul.f32 %v2586_v18, %v1728_v14  ;;  %v2302_v10 = vadd.f32 %v2301_v63, %v2170_v51  ;;  %v2598_v63 = vld [vmem:[#allocation11 + $0xf8] sm:$0xff] }
 0x481   :  { %1963 = vbcast.lane.b32.xlu1 %v3601_v15, 288  ;;  %2101 = vbcast.lane.b32.xlu0 %v3621_v5, 296  ;;  %v2176_v6 = vmul.f32 %v2583_v19, %v1751_v32  ;;  %v2595_v32 = vld [vmem:[#allocation11 + $0x70] sm:$0xff]  ;;  %v2174_v39 = vmul.f32 %v2598_v63, %v3644_v23 }
 0x482   :  { %v2303_v61 = vadd.f32 %v2302_v10, %v2171_v54  ;;  %v2157_v40 = vmul.f32 %v2595_v32, %v3615_v45  ;;  %v2599_v45 = vld [vmem:[#allocation11 + $0x140] sm:$0xff]  ;;  %v2602_v10 = vld [vmem:[#allocation11 + $0x150] sm:$0xff] }
 0x483   :  { %v1736_v59 = vpop.permute.xlu1 %1735 }
 0x484   :  { %v1759_v46 = vpop.permute.xlu0 %1758  ;;  %v2173_v60 = vmul.f32 %v2593_v33, %v1736_v59  ;;  %v2304_v9 = vadd.f32 %v2303_v61, %v2172_v13  ;;  %v2607_v33 = vld [vmem:[#allocation11 + $0x178] sm:$0xff] }
 0x485   :  { %2030 = vbcast.lane.b32.xlu1 %v3611_v49, 288  ;;  %1975 = vbcast.lane.b32.xlu0 %v3601_v15, 312  ;;  %v2178_v57 = vmul.f32 %v2589_v50, %v1759_v46  ;;  %v2284_v46 = vadd.f32 %v2283_v55, %v2157_v40  ;;  %v2609_v55 = vld [vmem:[#allocation11 + $0x180] sm:$0xff] }
 0x486   :  { %v2305_v4 = vadd.f32 %v2304_v9, %v2173_v60 }
 0x487   :  { %v1747_v37 = vpop.permute.xlu1 %1746 }
 0x488   :  { %v2175_v12 = vmul.f32 %v2584_v38, %v1747_v37  ;;  %v1767_v36 = vpop.permute.xlu0 %1766 }
 0x489   :  { %2097 = vbcast.lane.b32.xlu1 %v3621_v5, 288  ;;  %2042 = vbcast.lane.b32.xlu0 %v3611_v49, 312  ;;  %v2180_v56 = vmul.f32 %v2594_v58, %v1767_v36  ;;  %v2601_v36 = vld [vmem:[#allocation11 + $0x148] sm:$0xff] }
 0x48a   :  { %v2313_v0 = vadd.f32 %v2176_v6, %v2175_v12  ;;  %v2600_v6 = vld [vmem:[#allocation11 + $0x78] sm:$0xff]  ;;  %v2306_v12 = vadd.f32 %v2305_v4, %v2174_v39 }
 0x48b   :  { %v1755_v20 = vpop.permute.xlu1 %1754  ;;  %v2158_v38 = vmul.f32 %v2600_v6, %v3604_v3  ;;  %v2603_v3 = vld [vmem:[#allocation11 + $0x158] sm:$0xff] }
 0x48c   :  { %v2177_v62 = vmul.f32 %v2588_v31, %v1755_v20  ;;  %v1775_v26 = vpop.permute.xlu0 %1774  ;;  %v2307_v52 = vrot.slane %v2306_v12, 4 }
 0x48d   :  { %1971 = vbcast.lane.b32.xlu1 %v3601_v15, 304  ;;  %2109 = vbcast.lane.b32.xlu0 %v3621_v5, 312  ;;  %v2182_v7 = vmul.f32 %v2597_v22, %v1775_v26  ;;  %v2285_v18 = vadd.f32 %v2284_v46, %v2158_v38  ;;  %v2604_v26 = vld [vmem:[#allocation11 + $0x160] sm:$0xff] }
 0x48e   :  { %v2314_v2 = vadd.f32 %v2313_v0, %v2177_v62 }
 0x48f   :  { %v1763_v21 = vpop.permute.xlu1 %1762  ;;  %v2286_v31 = vrot.slane %v2285_v18, 4 }
 0x490   :  { %v2179_v25 = vmul.f32 %v2591_v1, %v1763_v21  ;;  %v2315_v24 = vadd.f32 %v2314_v2, %v2178_v57  ;;  %v1783_v30 = vpop.permute.xlu0 %1782  ;;  %v2308_v2 = vadd.f32 %v2307_v52, %v2306_v12  ;;  %v2612_v12 = vld [vmem:[#allocation11 + $0x1a0] sm:$0xff] }
 0x491   :  { %2038 = vbcast.lane.b32.xlu1 %v3611_v49, 304  ;;  %1983 = vbcast.lane.b32.xlu0 %v3601_v15, 328  ;;  %v2184_v41 = vmul.f32 %v2601_v36, %v1783_v30  ;;  %v2287_v21 = vadd.f32 %v2286_v31, %v2285_v18 }
 0x492   :  { %v2316_v14 = vadd.f32 %v2315_v24, %v2179_v25  ;;  %v2606_v25 = vld [vmem:[#allocation11 + $0x170] sm:$0xff]  ;;  %v2309_v27 = vrot.slane %v2308_v2, 2 }
 0x493   :  { %v1771_v16 = vpop.permute.xlu1 %1770  ;;  %v2288_v58 = vrot.slane %v2287_v21, 2 }
 0x494   :  { %v2181_v47 = vmul.f32 %v2596_v34, %v1771_v16  ;;  %v2317_v42 = vadd.f32 %v2316_v14, %v2180_v56  ;;  %v1791_v53 = vpop.permute.xlu0 %1790  ;;  %v2608_v14 = vld [vmem:[#allocation11 + $0x188] sm:$0xff] }
 0x495   :  { %2105 = vbcast.lane.b32.xlu1 %v3621_v5, 304  ;;  %2050 = vbcast.lane.b32.xlu0 %v3611_v49, 328  ;;  %v2186_v8 = vmul.f32 %v2603_v3, %v1791_v53  ;;  %v2289_v4 = vadd.f32 %v2288_v58, %v2287_v21  ;;  %v2619_v58 = vld [vmem:[#allocation11 + $0x1d8] sm:$0xff] }
 0x496   :  { %v2318_v59 = vadd.f32 %v2317_v42, %v2181_v47  ;;  %v2310_v47 = vadd.f32 %v2309_v27, %v2308_v2  ;;  %v2618_v27 = vld [vmem:[#allocation11 + $0x1d0] sm:$0xff] }
 0x497   :  { %v1779_v43 = vpop.permute.xlu1 %1778 }
 0x498   :  { %v2183_v51 = vmul.f32 %v2599_v45, %v1779_v43  ;;  %v2319_v37 = vadd.f32 %v2318_v59, %v2182_v7  ;;  %v1799_v19 = vpop.permute.xlu0 %1798  ;;  %v2610_v59 = vld [vmem:[#allocation11 + $0x190] sm:$0xff]  ;;  %v2311_v39 = vrot.slane %v2310_v47, 1  ;;  %v2611_v45 = vld [vmem:[#allocation11 + $0x198] sm:$0xff] }
 0x499   :  { %1979 = vbcast.lane.b32.xlu1 %v3601_v15, 320  ;;  %2117 = vbcast.lane.b32.xlu0 %v3621_v5, 328  ;;  %v2188_v48 = vmul.f32 %v2605_v28, %v1799_v19  ;;  %v2290_v19 = vrot.slane %v2289_v4, 1 }
 0x49a   :  { %v2320_v11 = vadd.f32 %v2319_v37, %v2183_v51  ;;  %v2312_v18 = vadd.f32 %v2311_v39, %v2310_v47  ;;  %v2621_v47 = vld [vmem:[#allocation11 + $0x1e8] sm:$0xff]  ;;  %v2623_v39 = vld [vmem:[#allocation11 + $0x1f8] sm:$0xff] }
 0x49b   :  { %v1787_v54 = vpop.permute.xlu1 %1786 }
 0x49c   :  { %v2185_v23 = vmul.f32 %v2602_v10, %v1787_v54  ;;  %v2321_v0 = vadd.f32 %v2320_v11, %v2184_v41  ;;  %v1807_v29 = vpop.permute.xlu0 %1806  ;;  %v2613_v10 = vld [vmem:[#allocation11 + $0x1a8] sm:$0xff] }
 0x49d   :  { %2046 = vbcast.lane.b32.xlu1 %v3611_v49, 320  ;;  %2054 = vbcast.lane.b32.xlu0 %v3611_v49, 336  ;;  %v2190_v60 = vmul.f32 %v2607_v33, %v1807_v29  ;;  %v2291_v29 = vadd.f32 %v2290_v19, %v2289_v4 }
 0x49e   :  { %v2322_v20 = vadd.f32 %v2321_v0, %v2185_v23 }
 0x49f   :  { %v1795_v62 = vpop.permute.xlu1 %1794 }
 0x4a0   :  { %v2187_v61 = vmul.f32 %v2604_v26, %v1795_v62  ;;  %v2323_v50 = vadd.f32 %v2322_v20, %v2186_v8  ;;  %v1818_v57 = vpop.permute.xlu0 %1817  ;;  %v2614_v8 = vld [vmem:[#allocation11 + $0x1b0] sm:$0xff]  ;;  %v2447_v26 = vsel %vm3843_vm8, %v2312_v18, %v2291_v29  ;;  %v2627_v29 = vld [vmem:[#allocation11 + $0x218] sm:$0xff] }
 0x4a1   :  { %2113 = vbcast.lane.b32.xlu1 %v3621_v5, 320  ;;  %2121 = vbcast.lane.b32.xlu0 %v3621_v5, 336  ;;  %v2192_v32 = vmul.f32 %v2608_v14, %v1818_v57 }
 0x4a2   :  { %v2324_v13 = vadd.f32 %v2323_v50, %v2187_v61  ;;  %v2615_v61 = vld [vmem:[#allocation11 + $0x1b8] sm:$0xff] }
 0x4a3   :  { %v1803_v1 = vpop.permute.xlu1 %1802 }
 0x4a4   :  { %v2189_v24 = vmul.f32 %v2606_v25, %v1803_v1  ;;  %v2325_v30 = vadd.f32 %v2324_v13, %v2188_v48  ;;  %v1826_v17 = vpop.permute.xlu0 %1825  ;;  %v2616_v48 = vld [vmem:[#allocation11 + $0x1c0] sm:$0xff]  ;;  %v2617_v25 = vld [vmem:[#allocation11 + $0x1c8] sm:$0xff] }
 0x4a5   :  { %1987 = vbcast.lane.b32.xlu1 %v3601_v15, 336  ;;  %2058 = vbcast.lane.b32.xlu0 %v3611_v49, 344  ;;  %v2194_v51 = vmul.f32 %v2611_v45, %v1826_v17 }
 0x4a6   :  { %v2326_v9 = vadd.f32 %v2325_v30, %v2189_v24 }
 0x4a7   :  { %v1814_v56 = vpop.permute.xlu1 %1813 }
 0x4a8   :  { %v2327_v40 = vadd.f32 %v2326_v9, %v2190_v60  ;;  %v2191_v16 = vmul.f32 %v2609_v55, %v1814_v56  ;;  %v1834_v34 = vpop.permute.xlu0 %1833 }
 0x4a9   :  { %1924 = vbcast.lane.b32.xlu1 %v3570_v44, 344  ;;  %2125 = vbcast.lane.b32.xlu0 %v3621_v5, 344  ;;  %v2196_v23 = vmul.f32 %v2613_v10, %v1834_v34  ;;  %v2626_v10 = vld [vmem:[#allocation11 + $0x210] sm:$0xff] }
 0x4aa   :  { %v2328_v42 = vrot.slane %v2327_v40, 4  ;;  %v2334_v53 = vadd.f32 %v2192_v32, %v2191_v16 }
 0x4ab   :  { %v1822_v22 = vpop.permute.xlu1 %1821 }
 0x4ac   :  { %v2329_v7 = vadd.f32 %v2328_v42, %v2327_v40  ;;  %v2193_v46 = vmul.f32 %v2610_v59, %v1822_v22  ;;  %v1842_v63 = vpop.permute.xlu0 %1841  ;;  %v2620_v40 = vld [vmem:[#allocation11 + $0x1e0] sm:$0xff]  ;;  %v2461_v22 = vld [vmem:[#allocation4] sm:$0xff] }
 0x4ad   :  { %1991 = vbcast.lane.b32.xlu1 %v3601_v15, 344  ;;  %2062 = vbcast.lane.b32.xlu0 %v3611_v49, 352  ;;  %v2198_v50 = vmul.f32 %v2615_v61, %v1842_v63  ;;  %2558 = vrcp.f32 %v2461_v22  ;;  %v2635_v22 = vld [vmem:[#allocation11 + $0x280] sm:$0xff] }
 0x4ae   :  { %v2330_v43 = vrot.slane %v2329_v7, 2  ;;  %v2335_v37 = vadd.f32 %v2334_v53, %v2193_v46 }
 0x4af   :  { %v1830_v6 = vpop.permute.xlu1 %1829 }
 0x4b0   :  { %v2331_v38 = vadd.f32 %v2330_v43, %v2329_v7  ;;  %v2195_v36 = vmul.f32 %v2612_v12, %v1830_v6  ;;  %v2336_v41 = vadd.f32 %v2335_v37, %v2194_v51  ;;  %v1850_v11 = vpop.permute.xlu0 %1849  ;;  %v2622_v7 = vld [vmem:[#allocation11 + $0x1f0] sm:$0xff]  ;;  %v2624_v37 = vld [vmem:[#allocation11 + $0x208] sm:$0xff] }
 0x4b1   :  { %1928 = vbcast.lane.b32.xlu1 %v3570_v44, 352  ;;  %2129 = vbcast.lane.b32.xlu0 %v3621_v5, 352  ;;  %v2200_v24 = vmul.f32 %v2617_v25, %v1850_v11 }
 0x4b2   :  { %v2332_v54 = vrot.slane %v2331_v38, 1  ;;  %v2337_v0 = vadd.f32 %v2336_v41, %v2195_v36 }
 0x4b3   :  { %v1838_v52 = vpop.permute.xlu1 %1837 }
 0x4b4   :  { %v2333_v3 = vadd.f32 %v2332_v54, %v2331_v38  ;;  %v2197_v20 = vmul.f32 %v2614_v8, %v1838_v52  ;;  %v2338_v31 = vadd.f32 %v2337_v0, %v2196_v23  ;;  %v1858_v62 = vpop.permute.xlu0 %1857  ;;  %v2625_v38 = vld [vmem:[#allocation11 + $0x200] sm:$0xff] }
 0x4b5   :  { %1995 = vbcast.lane.b32.xlu1 %v3601_v15, 352  ;;  %2066 = vbcast.lane.b32.xlu0 %v3611_v49, 360  ;;  %v2202_v56 = vmul.f32 %v2619_v58, %v1858_v62 }
 0x4b6   :  { %v2339_v57 = vadd.f32 %v2338_v31, %v2197_v20  ;;  %v3687_v2 = vsel %vm1564_vm1, %v2333_v3, %v2447_v26  ;;  %v2628_v31 = vld [vmem:[#allocation11 + $0x220] sm:$0xff] }
 0x4b7   :  { %v1846_v28 = vpop.permute.xlu1 %1845 }
 0x4b8   :  { %v2199_v13 = vmul.f32 %v2616_v48, %v1846_v28  ;;  %v2340_v21 = vadd.f32 %v2339_v57, %v2198_v50  ;;  %v1866_v1 = vpop.permute.xlu0 %1865  ;;  %v2629_v50 = vld [vmem:[#allocation11 + $0x228] sm:$0xff] }
 0x4b9   :  { %1932 = vbcast.lane.b32.xlu1 %v3570_v44, 360  ;;  %2133 = vbcast.lane.b32.xlu0 %v3621_v5, 360  ;;  %v2204_v42 = vmul.f32 %v2621_v47, %v1866_v1 }
 0x4ba   :  { %v2341_v30 = vadd.f32 %v2340_v21, %v2199_v13  ;;  %v2559_v13 = vpop.eup %2558 }
 0x4bb   :  { %v1854_v17 = vpop.permute.xlu1 %1853 }
 0x4bc   :  { %v2201_v33 = vmul.f32 %v2618_v27, %v1854_v17  ;;  %v2342_v60 = vadd.f32 %v2341_v30, %v2200_v24  ;;  %v1874_v9 = vpop.permute.xlu0 %1873  ;;  %v2631_v30 = vld [vmem:[#allocation11 + $0x238] sm:$0xff] }
 0x4bd   :  { %1999 = vbcast.lane.b32.xlu1 %v3601_v15, 360  ;;  %2070 = vbcast.lane.b32.xlu0 %v3611_v49, 368  ;;  %v2206_v43 = vmul.f32 %v2623_v39, %v1874_v9 }
 0x4be   :  { %v2343_v14 = vadd.f32 %v2342_v60, %v2201_v33  ;;  %v2632_v60 = vld [vmem:[#allocation11 + $0x240] sm:$0xff] }
 0x4bf   :  { %v1862_v32 = vpop.permute.xlu1 %1861 }
 0x4c0   :  { %v2203_v55 = vmul.f32 %v2620_v40, %v1862_v32  ;;  %v2344_v16 = vadd.f32 %v2343_v14, %v2202_v56  ;;  %v1885_v34 = vpop.permute.xlu0 %1884  ;;  %v2633_v14 = vld [vmem:[#allocation11 + $0x248] sm:$0xff] }
 0x4c1   :  { %1936 = vbcast.lane.b32.xlu1 %v3570_v44, 368  ;;  %2137 = vbcast.lane.b32.xlu0 %v3621_v5, 368  ;;  %v2208_v19 = vmul.f32 %v2624_v37, %v1885_v34 }
 0x4c2   :  { %v2345_v53 = vadd.f32 %v2344_v16, %v2203_v55  ;;  %v2634_v16 = vld [vmem:[#allocation11 + $0x250] sm:$0xff] }
 0x4c3   :  { %v1870_v4 = vpop.permute.xlu1 %1869 }
 0x4c4   :  { %v2205_v59 = vmul.f32 %v2622_v7, %v1870_v4  ;;  %v2346_v46 = vadd.f32 %v2345_v53, %v2204_v42  ;;  %v1893_v63 = vpop.permute.xlu0 %1892 }
 0x4c5   :  { %2003 = vbcast.lane.b32.xlu1 %v3601_v15, 368  ;;  %2141 = vbcast.lane.b32.xlu0 %v3621_v5, 376  ;;  %v2210_v52 = vmul.f32 %v2627_v29, %v1893_v63  ;;  %v2637_v63 = vld [vmem:[#allocation11 + $0x290] sm:$0xff] }
 0x4c6   :  { %v2347_v45 = vadd.f32 %v2346_v46, %v2205_v59 }
 0x4c7   :  { %v1881_v51 = vpop.permute.xlu1 %1880 }
 0x4c8   :  { %v2348_v6 = vadd.f32 %v2347_v45, %v2206_v43  ;;  %v2207_v12 = vmul.f32 %v2625_v38, %v1881_v51  ;;  %v1901_v36 = vpop.permute.xlu0 %1900  ;;  %v2638_v51 = vld [vmem:[#allocation11 + $0x300] sm:$0xff] }
 0x4c9   :  { %1940 = vbcast.lane.b32.xlu1 %v3570_v44, 376  ;;  %v2212_v57 = vmul.f32 %v2629_v50, %v1901_v36 }
 0x4ca   :  { %v2349_v41 = vrot.slane %v2348_v6, 4  ;;  %v2355_v11 = vadd.f32 %v2208_v19, %v2207_v12  ;;  %v2639_v19 = vld [vmem:[#allocation11 + $0x308] sm:$0xff] }
 0x4cb   :  { %v1889_v18 = vpop.permute.xlu1 %1888 }
 0x4cc   :  { %v2350_v54 = vadd.f32 %v2349_v41, %v2348_v6  ;;  %v2209_v23 = vmul.f32 %v2626_v10, %v1889_v18  ;;  %v1909_v5 = vpop.permute.xlu0 %1908 }
 0x4cd   :  { %2007 = vbcast.lane.b32.xlu1 %v3601_v15, 376  ;;  %v2630_v15 = vld [vmem:[#allocation11 + $0x230] sm:$0xff]  ;;  %v2214_v17 = vmul.f32 %v2631_v30, %v1909_v5 }
 0x4ce   :  { %v2351_v0 = vrot.slane %v2350_v54, 2  ;;  %v2356_v3 = vadd.f32 %v2355_v11, %v2209_v23  ;;  %v2640_v11 = vld [vmem:[#allocation11 + $0x388] sm:$0xff] }
 0x4cf   :  { %v1897_v8 = vpop.permute.xlu1 %1896 }
 0x4d0   :  { %v2352_v20 = vadd.f32 %v2351_v0, %v2350_v54  ;;  %v2211_v62 = vmul.f32 %v2628_v31, %v1897_v8  ;;  %v2357_v26 = vadd.f32 %v2356_v3, %v2210_v52  ;;  %v1917_v61 = vpop.permute.xlu0 %1916  ;;  %v2641_v54 = vld [vmem:[#allocation11 + $0x380] sm:$0xff] }
 0x4d1   :  { %2074 = vbcast.lane.b32.xlu1 %v3611_v49, 376  ;;  %v2216_v32 = vmul.f32 %v2633_v14, %v1917_v61  ;;  %v2643_v14 = vld [vmem:[#allocation11 + $0x310] sm:$0xff] }
 0x4d2   :  { %v2353_v44 = vrot.slane %v2352_v20, 1  ;;  %v2358_v28 = vadd.f32 %v2357_v26, %v2211_v62 }
 0x4d3   :  { %v1905_v48 = vpop.permute.xlu1 %1904 }
 0x4d4   :  { %v2354_v21 = vadd.f32 %v2353_v44, %v2352_v20  ;;  %v2213_v1 = vmul.f32 %v2630_v15, %v1905_v48  ;;  %v2359_v25 = vadd.f32 %v2358_v28, %v2212_v57  ;;  %v1948_v24 = vpop.permute.xlu0 %1947 }
 0x4d5   :  { %2466 = vperm.xlu1 %2552, %v2559_v13   ;;  %v2223_v7 = vmul.f32 %v2635_v22, %v1948_v24 }
 0x4d6   :  { %v2360_v27 = vadd.f32 %v2359_v25, %v2213_v1  ;;  %v3702_v33 = vsel %vm1566_vm2, %v2354_v21, %v3687_v2  ;;  %v2636_v2 = vld [vmem:[#allocation11 + $0x288] sm:$0xff] }
 0x4d7   :  { %v1913_v49 = vpop.permute.xlu1 %1912 }
 0x4d8   :  { %v2215_v9 = vmul.f32 %v2632_v60, %v1913_v49  ;;  %v2361_v58 = vadd.f32 %v2360_v27, %v2214_v17  ;;  %v2015_v56 = vpop.permute.xlu0 %2014  ;;  %v2642_v17 = vld [vmem:[#allocation11 + $0x390] sm:$0xff] }
 0x4d9   :  { %v2239_v37 = vmul.f32 %v2638_v51, %v2015_v56 }
 0x4da   :  { %v2362_v40 = vadd.f32 %v2361_v58, %v2215_v9 }
 0x4db   :  { %v1921_v55 = vpop.permute.xlu1 %1920 }
 0x4dc   :  { %v2217_v34 = vmul.f32 %v2634_v16, %v1921_v55  ;;  %v2363_v47 = vadd.f32 %v2362_v40, %v2216_v32  ;;  %v1956_v42 = vpop.permute.xlu0 %1955  ;;  %v2644_v40 = vld [vmem:[#allocation11 + $0x398] sm:$0xff]  ;;  %v2645_v16 = vld [vmem:[#allocation11 + $0x3a0] sm:$0xff] }
 0x4dd   :  { %v2225_v39 = vmul.f32 %v2637_v63, %v1956_v42 }
 0x4de   :  { %v3704_v53 = vadd.f32 %v2363_v47, %v2217_v34 }
 0x4df   :  { %v1952_v4 = vpop.permute.xlu1 %1951 }
 0x4e0   :  { %v2224_v59 = vmul.f32 %v2636_v2, %v1952_v4  ;;  %v2086_v46 = vpop.permute.xlu0 %2085  ;;  %v2646_v4 = vld [vmem:[#allocation11 + $0x298] sm:$0xff] }
 0x4e1   :  { %v2256_v18 = vmul.f32 %v2640_v11, %v2086_v46  ;;  %v2647_v46 = vld [vmem:[#allocation11 + $0x2a0] sm:$0xff] }
 0x4e2   :  { %v2376_v43 = vadd.f32 %v2224_v59, %v2223_v7 }
 0x4e3   :  { %v2019_v45 = vpop.permute.xlu1 %2018 }
 0x4e4   :  { %v2240_v6 = vmul.f32 %v2639_v19, %v2019_v45  ;;  %v3706_v38 = vadd.f32 %v2376_v43, %v2225_v39  ;;  %v1960_v12 = vpop.permute.xlu0 %1959  ;;  %v2648_v39 = vld [vmem:[#allocation11 + $0x318] sm:$0xff]  ;;  %v2649_v45 = vld [vmem:[#allocation11 + $0x320] sm:$0xff] }
 0x4e5   :  { %v2226_v22 = vmul.f32 %v2646_v4, %v1960_v12 }
 0x4e6   :  { %v2397_v36 = vadd.f32 %v2240_v6, %v2239_v37  ;;  %v2650_v37 = vld [vmem:[#allocation11 + $0x3a8] sm:$0xff]  ;;  %v2651_v6 = vld [vmem:[#allocation11 + $0x3b0] sm:$0xff] }
 0x4e7   :  { %v2082_v41 = vpop.permute.xlu1 %2081 }
 0x4e8   :  { %v2255_v10 = vmul.f32 %v2641_v54, %v2082_v41  ;;  %v2027_v23 = vpop.permute.xlu0 %2026 }
 0x4e9   :  { %v2242_v43 = vmul.f32 %v2648_v39, %v2027_v23 }
 0x4ea   :  { %v2418_v5 = vadd.f32 %v2256_v18, %v2255_v10  ;;  %v2378_v18 = vadd.f32 %v3706_v38, %v2226_v22 }
 0x4eb   :  { %v2023_v0 = vpop.permute.xlu1 %2022 }
 0x4ec   :  { %v2094_v29 = vpop.permute.xlu0 %2093  ;;  %v2241_v32 = vmul.f32 %v2643_v14, %v2023_v0  ;;  %v2657_v14 = vld [vmem:[#allocation11 + $0x3c0] sm:$0xff] }
 0x4ed   :  { %v2258_v55 = vmul.f32 %v2644_v40, %v2094_v29 }
 0x4ee   :  { %v2398_v2 = vadd.f32 %v2397_v36, %v2241_v32 }
 0x4ef   :  { %v2090_v52 = vpop.permute.xlu1 %2089 }
 0x4f0   :  { %v1968_v3 = vpop.permute.xlu0 %1967  ;;  %v2257_v27 = vmul.f32 %v2642_v17, %v2090_v52  ;;  %v2399_v12 = vadd.f32 %v2398_v2, %v2242_v43  ;;  %v2652_v52 = vld [vmem:[#allocation11 + $0x2a8] sm:$0xff]  ;;  %v2658_v2 = vld [vmem:[#allocation11 + $0x2b8] sm:$0xff] }
 0x4f1   :  { %v2228_v23 = vmul.f32 %v2652_v52, %v1968_v3  ;;  %v2668_v52 = vld [vmem:[#allocation11 + $0x260] sm:$0xff] }
 0x4f2   :  { %v2419_v9 = vadd.f32 %v2418_v5, %v2257_v27 }
 0x4f3   :  { %v1964_v8 = vpop.permute.xlu1 %1963 }
 0x4f4   :  { %v2035_v20 = vpop.permute.xlu0 %2034  ;;  %v2420_v47 = vadd.f32 %v2419_v9, %v2258_v55  ;;  %v2227_v63 = vmul.f32 %v2647_v46, %v1964_v8  ;;  %v2653_v8 = vld [vmem:[#allocation11 + $0x2b0] sm:$0xff]  ;;  %v2656_v9 = vld [vmem:[#allocation11 + $0x3b8] sm:$0xff]  ;;  %v2661_v46 = vld [vmem:[#allocation11 + $0x340] sm:$0xff] }
 0x4f6   :  { %v2379_v5 = vadd.f32 %v2378_v18, %v2227_v63  ;;  %v2662_v63 = vld [vmem:[#allocation11 + $0x3c8] sm:$0xff]  ;;  %v2664_v18 = vld [vmem:[#allocation11 + $0x258] sm:$0xff] }
 0x4f7   :  { %v2031_v31 = vpop.permute.xlu1 %2030 }
 0x4f8   :  { %v2102_v62 = vpop.permute.xlu0 %2101  ;;  %v2243_v51 = vmul.f32 %v2649_v45, %v2031_v31  ;;  %v2380_v40 = vadd.f32 %v2379_v5, %v2228_v23  ;;  %v2666_v5 = vld [vmem:[#allocation11 + $0x2c8] sm:$0xff] }
 0x4f9   :  { %v2260_v19 = vmul.f32 %v2650_v37, %v2102_v62  ;;  %v2654_v62 = vld [vmem:[#allocation11 + $0x328] sm:$0xff] }
 0x4fa   :  { %v2400_v36 = vadd.f32 %v2399_v12, %v2243_v51  ;;  %v2244_v17 = vmul.f32 %v2654_v62, %v2035_v20 }
 0x4fb   :  { %v2098_v26 = vpop.permute.xlu1 %2097 }
 0x4fc   :  { %v3708_v61 = vpop.permute.xlu0 %1975  ;;  %v2259_v34 = vmul.f32 %v2645_v16, %v2098_v26  ;;  %v2401_v55 = vadd.f32 %v2400_v36, %v2244_v17  ;;  %v2667_v36 = vld [vmem:[#allocation11 + $0x2d0] sm:$0xff]  ;;  %v2670_v17 = vld [vmem:[#allocation11 + $0x3e0] sm:$0xff] }
 0x4fe   :  { %v2421_v59 = vadd.f32 %v2420_v47, %v2259_v34 }
 0x4ff   :  { %v1972_v44 = vpop.permute.xlu1 %1971 }
 0x500   :  { %v3710_v50 = vpop.permute.xlu0 %2042  ;;  %v2422_v10 = vadd.f32 %v2421_v59, %v2260_v19  ;;  %v2229_v31 = vmul.f32 %v2653_v8, %v1972_v44  ;;  %v2230_v44 = vmul.f32 %v2658_v2, %v3708_v61  ;;  %v2659_v59 = vld [vmem:[#allocation11 + $0x2c0] sm:$0xff] }
 0x502   :  { %v2381_v47 = vadd.f32 %v2380_v40, %v2229_v31  ;;  %v2669_v31 = vld [vmem:[#allocation11 + $0x348] sm:$0xff] }
 0x503   :  { %v2039_v57 = vpop.permute.xlu1 %2038  ;;  %v2674_v40 = vld [vmem:[#allocation11 + $0x3e8] sm:$0xff] }
 0x504   :  { %v2110_v28 = vpop.permute.xlu0 %2109  ;;  %v2382_v45 = vadd.f32 %v2381_v47, %v2230_v44  ;;  %v2677_v44 = vld [vmem:[#allocation11 + $0x358] sm:$0xff] }
 0x505   :  { %v2262_v38 = vmul.f32 %v2656_v9, %v2110_v28 }
 0x507   :  { %v2106_v48 = vpop.permute.xlu1 %2105 }
 0x508   :  { %v3712_v13 = vpop.permute.xlu0 %1983  ;;  %v2261_v41 = vmul.f32 %v2651_v6, %v2106_v48  ;;  %v2655_v48 = vld [vmem:[#allocation11 + $0x330] sm:$0xff] }
 0x509   :  { %v2245_v27 = vmul.f32 %v2655_v48, %v2039_v57  ;;  %v2660_v57 = vld [vmem:[#allocation11 + $0x338] sm:$0xff]  ;;  %v2663_v6 = vld [vmem:[#allocation11 + $0x3d0] sm:$0xff] }
 0x50a   :  { %v2423_v0 = vadd.f32 %v2422_v10, %v2261_v41  ;;  %v2246_v28 = vmul.f32 %v2660_v57, %v3710_v50  ;;  %v2665_v50 = vld [vmem:[#allocation11 + $0x3d8] sm:$0xff] }
 0x50b   :  { %v3714_v21 = vpop.permute.xlu1 %1979  ;;  %v2402_v22 = vadd.f32 %v2401_v55, %v2245_v27 }
 0x50c   :  { %v3716_v15 = vpop.permute.xlu0 %2050  ;;  %v2424_v16 = vadd.f32 %v2423_v0, %v2262_v38  ;;  %v2231_v20 = vmul.f32 %v2659_v59, %v3714_v21  ;;  %v2672_v38 = vld [vmem:[#allocation11 + $0x268] sm:$0xff]  ;;  %v2678_v59 = vld [vmem:[#allocation11 + $0x3f0] sm:$0xff] }
 0x50d   :  { %v2403_v37 = vadd.f32 %v2402_v22, %v2246_v28  ;;  %v2675_v22 = vld [vmem:[#allocation11 + $0x2e0] sm:$0xff]  ;;  %v2679_v28 = vld [vmem:[#allocation11 + $0x2e8] sm:$0xff] }
 0x50e   :  { %v2383_v41 = vadd.f32 %v2382_v45, %v2231_v20 }
 0x50f   :  { %v3718_v1 = vpop.permute.xlu1 %2046 }
 0x510   :  { %v3720_v25 = vpop.permute.xlu0 %2117 }
 0x511   :  { %v2264_v39 = vmul.f32 %v2662_v63, %v3720_v25  ;;  %v2232_v25 = vmul.f32 %v2666_v5, %v3712_v13  ;;  %v2680_v63 = vld [vmem:[#allocation11 + $0x360] sm:$0xff] }
 0x513   :  { %v2114_v24 = vpop.permute.xlu1 %2113  ;;  %v2384_v48 = vadd.f32 %v2383_v41, %v2232_v25 }
 0x514   :  { %v3722_v30 = vpop.permute.xlu0 %2054  ;;  %v2263_v32 = vmul.f32 %v2657_v14, %v2114_v24  ;;  %v2247_v24 = vmul.f32 %v2661_v46, %v3718_v1 }
 0x516   :  { %v2425_v3 = vadd.f32 %v2424_v16, %v2263_v32  ;;  %v2404_v12 = vadd.f32 %v2403_v37, %v2247_v24  ;;  %v2673_v32 = vld [vmem:[#allocation11 + $0x350] sm:$0xff] }
 0x517   :  { %v3724_v49 = vpop.permute.xlu1 %1987 }
 0x518   :  { %v3726_v60 = vpop.permute.xlu0 %2121  ;;  %v2426_v19 = vadd.f32 %v2425_v3, %v2264_v39  ;;  %v2233_v0 = vmul.f32 %v2667_v36, %v3724_v49  ;;  %v2249_v49 = vmul.f32 %v2673_v32, %v3722_v30  ;;  %v2676_v3 = vld [vmem:[#allocation11 + $0x270] sm:$0xff] }
 0x519   :  { %v2265_v61 = vmul.f32 %v2663_v6, %v3726_v60  ;;  %v2248_v60 = vmul.f32 %v2669_v31, %v3716_v15 }
 0x51a   :  { %v2385_v15 = vadd.f32 %v2384_v48, %v2233_v0  ;;  %v2685_v0 = vld [vmem:[#allocation11 + $0x370] sm:$0xff] }
 0x51b   :  { %v3728_v58 = vpop.permute.xlu1 %1924  ;;  %v2427_v62 = vadd.f32 %v2426_v19, %v2265_v61  ;;  %v2405_v14 = vadd.f32 %v2404_v12, %v2248_v60  ;;  %v2681_v19 = vld [vmem:[#allocation11 + $0x2f0] sm:$0xff]  ;;  %v2682_v61 = vld [vmem:[#allocation11 + $0x278] sm:$0xff] }
 0x51c   :  { %v3730_v56 = vpop.permute.xlu0 %2058  ;;  %v2218_v21 = vmul.f32 %v2664_v18, %v3728_v58  ;;  %v2683_v12 = vld [vmem:[#allocation11 + $0x3f8] sm:$0xff] }
 0x51d   :  { %v2406_v24 = vadd.f32 %v2405_v14, %v2249_v49  ;;  %v2686_v60 = vld [vmem:[#allocation11 + $0x2f8] sm:$0xff] }
 0x51e   :  { %v2365_v27 = vadd.f32 %v3704_v53, %v2218_v21  ;;  %v2687_v14 = vld [vmem:[#allocation11 + $0x378] sm:$0xff] }
 0x51f   :  { %v3732_v42 = vpop.permute.xlu1 %1991 }
 0x520   :  { %v3734_v7 = vpop.permute.xlu0 %2125 }
 0x521   :  { %v2266_v10 = vmul.f32 %v2665_v50, %v3734_v7  ;;  %v2671_v7 = vld [vmem:[#allocation11 + $0x2d8] sm:$0xff] }
 0x522   :  { %v2234_v9 = vmul.f32 %v2671_v7, %v3732_v42  ;;  %v2250_v42 = vmul.f32 %v2677_v44, %v3730_v56 }
 0x523   :  { %v1929_v11 = vpop.permute.xlu1 %1928 }
 0x524   :  { %v3737_v54 = vpop.permute.xlu0 %2062  ;;  %v2219_v23 = vmul.f32 %v2668_v52, %v1929_v11  ;;  %v2428_v11 = vadd.f32 %v2427_v62, %v2266_v10  ;;  %v2386_v57 = vadd.f32 %v2385_v15, %v2234_v9  ;;  %v2407_v18 = vadd.f32 %v2406_v24, %v2250_v42  ;;  %v2684_v10 = vld [vmem:[#allocation11 + $0x368] sm:$0xff] }
 0x525   :  { %v2251_v39 = vmul.f32 %v2680_v63, %v3737_v54 }
 0x526   :  { %v2366_v47 = vadd.f32 %v2365_v27, %v2219_v23 }
 0x527   :  { %v3739_v29 = vpop.permute.xlu1 %1995  ;;  %v2408_v25 = vadd.f32 %v2407_v18, %v2251_v39 }
 0x528   :  { %v2130_v26 = vpop.permute.xlu0 %2129 }
 0x529   :  { %v2267_v58 = vmul.f32 %v2670_v17, %v2130_v26  ;;  %v2235_v26 = vmul.f32 %v2675_v22, %v3739_v29 }
 0x52b   :  { %v1933_v34 = vpop.permute.xlu1 %1932  ;;  %v2387_v29 = vadd.f32 %v2386_v57, %v2235_v26 }
 0x52c   :  { %v3741_v4 = vpop.permute.xlu0 %2066  ;;  %v2220_v13 = vmul.f32 %v2672_v38, %v1933_v34  ;;  %v2429_v34 = vadd.f32 %v2428_v11, %v2267_v58 }
 0x52e   :  { %v2367_v30 = vadd.f32 %v2366_v47, %v2220_v13 }
 0x52f   :  { %v2000_v43 = vpop.permute.xlu1 %1999 }
 0x530   :  { %v2134_v51 = vpop.permute.xlu0 %2133  ;;  %v2236_v46 = vmul.f32 %v2679_v28, %v2000_v43  ;;  %v2252_v43 = vmul.f32 %v2684_v10, %v3741_v4 }
 0x531   :  { %v2268_v55 = vmul.f32 %v2674_v40, %v2134_v51 }
 0x532   :  { %v2409_v58 = vadd.f32 %v2408_v25, %v2252_v43 }
 0x533   :  { %v1937_v1 = vpop.permute.xlu1 %1936  ;;  %v2430_v45 = vadd.f32 %v2429_v34, %v2268_v55 }
 0x534   :  { %v2071_v8 = vpop.permute.xlu0 %2070  ;;  %v2221_v53 = vmul.f32 %v2676_v3, %v1937_v1  ;;  %v2388_v1 = vadd.f32 %v2387_v29, %v2236_v46  ;;  %v1606_v46 = vmul.f32 0.0, %v3572_v35 }
 0x535   :  { %v2253_v52 = vmul.f32 %v2685_v0, %v2071_v8 }
 0x536   :  { %v2368_v37 = vadd.f32 %v2367_v30, %v2221_v53 }
 0x537   :  { %v2004_v16 = vpop.permute.xlu1 %2003  ;;  %v2410_v38 = vadd.f32 %v2409_v58, %v2253_v52 }
 0x538   :  { %v2138_v2 = vpop.permute.xlu0 %2137  ;;  %v2237_v6 = vmul.f32 %v2681_v19, %v2004_v16 }
 0x539   :  { %v2269_v20 = vmul.f32 %v2678_v59, %v2138_v2 }
 0x53a   :  { %v2389_v23 = vadd.f32 %v2388_v1, %v2237_v6 }
 0x53b   :  { %v1941_v51 = vpop.permute.xlu1 %1940  ;;  %v2431_v21 = vadd.f32 %v2430_v45, %v2269_v20 }
 0x53c   :  { %v2222_v41 = vmul.f32 %v2682_v61, %v1941_v51  ;;  %v2142_v56 = vpop.permute.xlu0 %2141 }
 0x53d   :  { %v2270_v50 = vmul.f32 %v2683_v12, %v2142_v56 }
 0x53e   :  { %v2369_v5 = vadd.f32 %v2368_v37, %v2222_v41 }
 0x53f   :  { %v2432_v54 = vadd.f32 %v2431_v21, %v2270_v50  ;;  %v2008_v36 = vpop.permute.xlu1 %2007 }
 0x540   :  { %v2370_v31 = vrot.slane %v2369_v5, 4  ;;  %v2238_v62 = vmul.f32 %v2686_v60, %v2008_v36 }
 0x541   :  { %v2433_v17 = vrot.slane %v2432_v54, 4 }
 0x542   :  { %v2371_v48 = vadd.f32 %v2370_v31, %v2369_v5  ;;  %v2390_v27 = vadd.f32 %v2389_v23, %v2238_v62 }
 0x543   :  { %v2434_v7 = vadd.f32 %v2433_v17, %v2432_v54  ;;  %v2075_v9 = vpop.permute.xlu1 %2074 }
 0x544   :  { %v2372_v13 = vrot.slane %v2371_v48, 2  ;;  %v2391_v4 = vrot.slane %v2390_v27, 4  ;;  %v2254_v32 = vmul.f32 %v2687_v14, %v2075_v9 }
 0x545   :  { %v2435_v55 = vrot.slane %v2434_v7, 2 }
 0x546   :  { %v2373_v49 = vadd.f32 %v2372_v13, %v2371_v48  ;;  %v2392_v11 = vadd.f32 %v2391_v4, %v2390_v27  ;;  %v2411_v40 = vadd.f32 %v2410_v38, %v2254_v32 }
 0x547   :  { %v2436_v3 = vadd.f32 %v2435_v55, %v2434_v7 }
 0x548   :  { %v2374_v8 = vrot.slane %v2373_v49, 1  ;;  %v2393_v16 = vrot.slane %v2392_v11, 2  ;;  %v2412_v15 = vrot.slane %v2411_v40, 4 }
 0x549   :  { %v2437_v59 = vrot.slane %v2436_v3, 1 }
 0x54a   :  { %v2375_v47 = vadd.f32 %v2374_v8, %v2373_v49  ;;  %v2394_v22 = vadd.f32 %v2393_v16, %v2392_v11  ;;  %v2413_v26 = vadd.f32 %v2412_v15, %v2411_v40 }
 0x54b   :  { %v2438_v28 = vadd.f32 %v2437_v59, %v2436_v3 }
 0x54c   :  { %v2395_v53 = vrot.slane %v2394_v22, 1  ;;  %v2414_v2 = vrot.slane %v2413_v26, 2  ;;  %v2450_v44 = vsel %vm1568_vm3, %v2375_v47, %v3702_v33 }
 0x54e   :  { %v2396_v42 = vadd.f32 %v2395_v53, %v2394_v22  ;;  %v2415_v34 = vadd.f32 %v2414_v2, %v2413_v26 }
 0x550   :  { %v2416_v20 = vrot.slane %v2415_v34, 1  ;;  %v2451_v57 = vsel %vm1570_vm4, %v2396_v42, %v2450_v44  ;;  %v2467_v45 = vpop.permute.xlu1 %2466 }
 0x552   :  { %v2417_v30 = vadd.f32 %v2416_v20, %v2415_v34 }
 0x554   :  { %v2452_v24 = vsel %vm1572_vm5, %v2417_v30, %v2451_v57 }
 0x555   :  { %v2453_v63 = vsel %vm1574_vm6, %v2438_v28, %v2452_v24 }
 0x556   :  { %v2455_v39 = vadd.f32 %v2453_v63, %v1606_v46 }
 0x558   :  { %v2469_v51 = vmul.f32 %v2467_v45, %v2455_v39 }
 0x55a   :  { %2470 = vst [vmem:[#allocation14] sm:$0xff] %v2469_v51 }
 0x55b   :  { %2779 = shalt.err (!%p2776_p10)
}
 0x55c   :  { %2480 = dma.vmem_to_hbm [thread:$0]  %s2478_s3, 128, %s3774_s4, [#allocation8]  }
 0x55d   :  { %2794 = dma.done.wait [#allocation8], 128  }
 0x55e   :  { %2795 = vsyncadd [#allocation8], 4294967168 }
 0x55f   :  { %2484 = vsyncpa [#allocation7], 1 }
 0x560   :  { %2485 = vsyncpa [#allocation10], 1 }
 0x561   :  { %2486 = vsyncpa [#allocation13], 1 }
 0x562   :  { %2487 = vsyncpa [#allocation8], 1 }

</bundles_post_ra>
